<compile_context>
chip_gen: v5e
topology: v5e:2x2
jax: 0.10.0
libtpu: 0.0.40
codegen_flags: <defaults>
</compile_context>

<pallas_src>
import functools

import jax
import jax.numpy as jnp
from jax.experimental import pallas as pl
from jax.experimental.pallas import tpu as pltpu

LANE = 128       # TPU lane width — pad the tiny logits dim to a full lane slab
BM_GRANULE = 16  # batch-tile granularity (bf16 sublane packing = 16 rows)


def _round_up(n, m):
    return (n + m - 1) // m * m


def _cdiv(a, b):
    return (a + b - 1) // b


def _mlp_kernel(x_ref,
                w1_ref, b1_ref,
                w2_ref, b2_ref,
                w3_ref, b3_ref,
                w4_ref, b4_ref,
                o_ref):
    # All matmuls take bf16 operands and accumulate in f32 on the MXU.
    # Bias add + ReLU run in f32 on the VPU; the bf16 cast for the next layer
    # is fused into the ReLU so intermediates are stored once, in bf16.
    h = jnp.dot(x_ref[...], w1_ref[...], preferred_element_type=jnp.float32)
    h = jnp.maximum(h + b1_ref[...], 0.0).astype(jnp.bfloat16)

    h = jnp.dot(h, w2_ref[...], preferred_element_type=jnp.float32)
    h = jnp.maximum(h + b2_ref[...], 0.0).astype(jnp.bfloat16)

    h = jnp.dot(h, w3_ref[...], preferred_element_type=jnp.float32)
    h = jnp.maximum(h + b3_ref[...], 0.0).astype(jnp.bfloat16)

    h = jnp.dot(h, w4_ref[...], preferred_element_type=jnp.float32)
    o_ref[...] = (h + b4_ref[...]).astype(o_ref.dtype)


@functools.partial(jax.jit, static_argnames=("block_b", "out_c"))
def mlp_forward(x, packed_params, block_b=512, out_c=10):
    """x: (B, 784) bf16 (producers should emit bf16 — an upstream f32 tensor is
    cast here only as a fallback); packed_params: bf16 weights (in, out), f32
    biases (1, out), last layer lane-padded to 128 columns.
    Returns (B, out_c) f32 logits."""
    (w1, b1), (w2, b2), (w3, b3), (w4, b4) = packed_params
    if x.dtype != jnp.bfloat16:
        # Fallback only; for full HBM-bandwidth benefit the producer should
        # already emit bf16 activations.
        x = x.astype(jnp.bfloat16)
    B, in_c = x.shape
    out_pad = w4.shape[1]   # 128 (lane-padded)

    # Grid / batch-tile choice:
    #   * at least cdiv(B, block_b) steps,
    #   * >= 2 steps once B >= 256 so v7x's two TensorCores both get a share
    #     (costs nothing on single-TC v5e/v6e),
    #   * bm rounded up only to the bf16 sublane granule to keep batch padding
    #     minimal (B=300 -> 2 x 160 rows, not 2 x 256).
    grid_n = _cdiv(B, block_b)
    if B >= 2 * LANE:
        grid_n = max(grid_n, 2)
    bm = _round_up(max(_cdiv(B, grid_n), BM_GRANULE), BM_GRANULE)
    b_pad = _round_up(B, bm)
    if b_pad != B:
        x = jnp.pad(x, ((0, b_pad - B), (0, 0)))
    grid = (b_pad // bm,)

    const_map = lambda i: (0, 0)
    x_spec = pl.BlockSpec((bm, in_c), lambda i: (i, 0))
    o_spec = pl.BlockSpec((bm, out_pad), lambda i: (i, 0))
    wb_specs = []
    for w, b in ((w1, b1), (w2, b2), (w3, b3), (w4, b4)):
        # Full-array blocks with a constant index_map: weights/biases stay
        # resident in VMEM across all grid steps (no per-step re-DMA).
        wb_specs.append(pl.BlockSpec(w.shape, const_map))
        wb_specs.append(pl.BlockSpec(b.shape, const_map))

    # Roofline bookkeeping for the scheduler.
    layer_dims = [(w1.shape[0], w1.shape[1]), (w2.shape[0], w2.shape[1]),
                  (w3.shape[0], w3.shape[1]), (w4.shape[0], w4.shape[1])]
    flops = 2 * b_pad * sum(fi * fo for fi, fo in layer_dims)
    weight_bytes = sum(int(w.size) * w.dtype.itemsize + int(b.size) * b.dtype.itemsize
                       for w, b in packed_params)
    bytes_accessed = (weight_bytes
                      + b_pad * in_c * x.dtype.itemsize     # bf16 x stream
                      + b_pad * out_pad * 4)                # f32 output stream

    # Honest VMEM estimate: double-buffered weights + double-buffered x/out
    # tiles + the compiler-allocated intermediate activations (f32 accumulator
    # plus its bf16 copy per hidden layer) + slack.
    hidden_cols = sum(fo for _, fo in layer_dims[:-1])      # 512 + 256 + 128
    vmem_est = (2 * weight_bytes
                + 2 * bm * in_c * x.dtype.itemsize
                + 2 * bm * out_pad * 4
                + bm * hidden_cols * (4 + 2)
                + (2 << 20))
    vmem_limit = max(int(vmem_est), 32 * 1024 * 1024)

    out = pl.pallas_call(
        _mlp_kernel,
        out_shape=jax.ShapeDtypeStruct((b_pad, out_pad), jnp.float32),
        grid=grid,
        in_specs=[x_spec] + wb_specs,
        out_specs=o_spec,
        compiler_params=pltpu.CompilerParams(
            dimension_semantics=("parallel",),
            vmem_limit_bytes=vmem_limit,
        ),
        cost_estimate=pl.CostEstimate(
            flops=int(flops), transcendentals=0,
            bytes_accessed=int(bytes_accessed)),
    )(x, w1, b1, w2, b2, w3, b3, w4, b4)

    return out[:B, :out_c]


def init_params(key, in_c=784, out_c=10):
    """f32 params mimicking nn.Linear default init U[-1/sqrt(fan_in), 1/sqrt(fan_in)]."""
    dims = [(in_c, 512), (512, 256), (256, 128), (128, out_c)]
    params = []
    for fan_in, fan_out in dims:
        key, kw, kb = jax.random.split(key, 3)
        bound = 1.0 / jnp.sqrt(jnp.float32(fan_in))
        w = jax.random.uniform(kw, (fan_in, fan_out), jnp.float32, -bound, bound)
        b = jax.random.uniform(kb, (1, fan_out), jnp.float32, -bound, bound)
        params.append((w, b))
    return params


def pack_params(params_f32, lane_pad=LANE):
    """Cast weights to bf16 (biases stay f32) and zero-pad the final layer's
    output dim to a full 128-lane slab for an unmasked store."""
    packed = []
    n = len(params_f32)
    for i, (w, b) in enumerate(params_f32):
        if i == n - 1 and w.shape[1] < lane_pad:
            pad = lane_pad - w.shape[1]
            w = jnp.pad(w, ((0, 0), (0, pad)))
            b = jnp.pad(b, ((0, 0), (0, pad)))
        packed.append((w.astype(jnp.bfloat16), b.astype(jnp.float32)))
    return packed


def reference_forward(x_bf16, packed_params, out_c=10):
    """Pure-JAX reference matching the kernel's numerics exactly:
    bf16 MXU inputs, f32 accumulation, bf16 inter-layer activations."""
    h = x_bf16.astype(jnp.bfloat16)
    n = len(packed_params)
    for i, (w, b) in enumerate(packed_params):
        h = jnp.dot(h, w, preferred_element_type=jnp.float32) + b
        if i < n - 1:
            h = jnp.maximum(h, 0.0).astype(jnp.bfloat16)
    return h[:, :out_c]


if __name__ == "__main__":
    key = jax.random.PRNGKey(0)
    kx, kx2, kp = jax.random.split(key, 3)

    in_c, out_c = 784, 10
    params = init_params(kp, in_c=in_c, out_c=out_c)
    packed = pack_params(params)

    # Small demo batch (B=2): single grid step, batch padded to the bf16 granule.
    # Producer emits bf16 activations (the kernel's input contract).
    B = 2
    x = jax.random.normal(kx, (B, in_c), jnp.float32).astype(jnp.bfloat16)
    out = jax.block_until_ready(mlp_forward(x, packed, out_c=out_c))
    ref = reference_forward(x, packed, out_c=out_c)
    assert out.shape == (B, out_c), out.shape
    assert jnp.allclose(out, ref, atol=2e-2, rtol=2e-2), "mismatch vs. reference (B=2)"

    # Larger ragged batch: exercises minimal-padding bm selection (300 -> 2x160
    # rows instead of 2x256), the >=2-step grid for v7x megacore sharding, and
    # weight-resident blocks across steps.
    B2 = 300
    x2 = jax.random.normal(kx2, (B2, in_c), jnp.float32).astype(jnp.bfloat16)
    out2 = jax.block_until_ready(mlp_forward(x2, packed, out_c=out_c))
    ref2 = reference_forward(x2, packed, out_c=out_c)
    assert out2.shape == (B2, out_c), out2.shape
    assert jnp.allclose(out2, ref2, atol=2e-2, rtol=2e-2), "mismatch vs. reference (B=300)"

    print("KERNEL_OK")
</pallas_src>

<mosaic_0001>
module attributes {stable_mosaic.version = 11 : i64} {
  func.func @_mlp_kernel(%arg0: i32, %arg1: memref<16x784xbf16, #tpu.memory_space<vmem>>, %arg2: memref<784x512xbf16, #tpu.memory_space<vmem>>, %arg3: memref<1x512xf32, #tpu.memory_space<vmem>>, %arg4: memref<512x256xbf16, #tpu.memory_space<vmem>>, %arg5: memref<1x256xf32, #tpu.memory_space<vmem>>, %arg6: memref<256x128xbf16, #tpu.memory_space<vmem>>, %arg7: memref<1x128xf32, #tpu.memory_space<vmem>>, %arg8: memref<128x128xbf16, #tpu.memory_space<vmem>>, %arg9: memref<1x128xf32, #tpu.memory_space<vmem>>, %arg10: memref<16x128xf32, #tpu.memory_space<vmem>>) attributes {dimension_semantics = [#tpu.dimension_semantics<parallel>], iteration_bounds = array<i64: 1>, scalar_prefetch = 0 : i64, scratch_operands = 0 : i64, tpu.core_type = #tpu.core_type<tc>, window_params = [{transform_indices = @transform_0, window_bounds = array<i64: 16, 784>}, {pipeline_mode = #tpu.pipeline_mode<synchronous>, transform_indices = @transform_1, window_bounds = array<i64: 784, 512>}, {pipeline_mode = #tpu.pipeline_mode<synchronous>, transform_indices = @transform_2, window_bounds = array<i64: 1, 512>}, {pipeline_mode = #tpu.pipeline_mode<synchronous>, transform_indices = @transform_3, window_bounds = array<i64: 512, 256>}, {pipeline_mode = #tpu.pipeline_mode<synchronous>, transform_indices = @transform_4, window_bounds = array<i64: 1, 256>}, {pipeline_mode = #tpu.pipeline_mode<synchronous>, transform_indices = @transform_5, window_bounds = array<i64: 256, 128>}, {pipeline_mode = #tpu.pipeline_mode<synchronous>, transform_indices = @transform_6, window_bounds = array<i64: 1, 128>}, {pipeline_mode = #tpu.pipeline_mode<synchronous>, transform_indices = @transform_7, window_bounds = array<i64: 128, 128>}, {pipeline_mode = #tpu.pipeline_mode<synchronous>, transform_indices = @transform_8, window_bounds = array<i64: 1, 128>}, {transform_indices = @transform_9, window_bounds = array<i64: 16, 128>}]} {
    %c0 = arith.constant 0 : index
    %c0_0 = arith.constant 0 : index
    %0 = vector.load %arg1[%c0, %c0_0] : memref<16x784xbf16, #tpu.memory_space<vmem>>, vector<16x784xbf16>
    %c0_1 = arith.constant 0 : index
    %c0_2 = arith.constant 0 : index
    %1 = vector.load %arg2[%c0_1, %c0_2] : memref<784x512xbf16, #tpu.memory_space<vmem>>, vector<784x512xbf16>
    %cst = arith.constant dense<0.000000e+00> : vector<16x512xf32>
    %2 = tpu.matmul %0, %1, %cst {dimension_numbers = #tpu.dot_dimension_numbers<[1], [0], [0], [1], [0, 0, 1, 1], [], []>} : vector<16x784xbf16>, vector<784x512xbf16>, vector<16x512xf32> -> vector<16x512xf32>
    %c0_3 = arith.constant 0 : index
    %c0_4 = arith.constant 0 : index
    %3 = vector.load %arg3[%c0_3, %c0_4] : memref<1x512xf32, #tpu.memory_space<vmem>>, vector<1x512xf32>
    %4 = vector.broadcast %3 : vector<1x512xf32> to vector<16x512xf32>
    %5 = arith.addf %2, %4 : vector<16x512xf32>
    %cst_5 = arith.constant 0.000000e+00 : f32
    %6 = vector.broadcast %cst_5 : f32 to vector<16x512xf32>
    %7 = arith.maximumf %5, %6 : vector<16x512xf32>
    %8 = arith.truncf %7 : vector<16x512xf32> to vector<16x512xbf16>
    %c0_6 = arith.constant 0 : index
    %c0_7 = arith.constant 0 : index
    %9 = vector.load %arg4[%c0_6, %c0_7] : memref<512x256xbf16, #tpu.memory_space<vmem>>, vector<512x256xbf16>
    %cst_8 = arith.constant dense<0.000000e+00> : vector<16x256xf32>
    %10 = tpu.matmul %8, %9, %cst_8 {dimension_numbers = #tpu.dot_dimension_numbers<[1], [0], [0], [1], [0, 0, 1, 1], [], []>} : vector<16x512xbf16>, vector<512x256xbf16>, vector<16x256xf32> -> vector<16x256xf32>
    %c0_9 = arith.constant 0 : index
    %c0_10 = arith.constant 0 : index
    %11 = vector.load %arg5[%c0_9, %c0_10] : memref<1x256xf32, #tpu.memory_space<vmem>>, vector<1x256xf32>
    %12 = vector.broadcast %11 : vector<1x256xf32> to vector<16x256xf32>
    %13 = arith.addf %10, %12 : vector<16x256xf32>
    %cst_11 = arith.constant 0.000000e+00 : f32
    %14 = vector.broadcast %cst_11 : f32 to vector<16x256xf32>
    %15 = arith.maximumf %13, %14 : vector<16x256xf32>
    %16 = arith.truncf %15 : vector<16x256xf32> to vector<16x256xbf16>
    %c0_12 = arith.constant 0 : index
    %c0_13 = arith.constant 0 : index
    %17 = vector.load %arg6[%c0_12, %c0_13] : memref<256x128xbf16, #tpu.memory_space<vmem>>, vector<256x128xbf16>
    %cst_14 = arith.constant dense<0.000000e+00> : vector<16x128xf32>
    %18 = tpu.matmul %16, %17, %cst_14 {dimension_numbers = #tpu.dot_dimension_numbers<[1], [0], [0], [1], [0, 0, 1, 1], [], []>} : vector<16x256xbf16>, vector<256x128xbf16>, vector<16x128xf32> -> vector<16x128xf32>
    %c0_15 = arith.constant 0 : index
    %c0_16 = arith.constant 0 : index
    %19 = vector.load %arg7[%c0_15, %c0_16] : memref<1x128xf32, #tpu.memory_space<vmem>>, vector<1x128xf32>
    %20 = vector.broadcast %19 : vector<1x128xf32> to vector<16x128xf32>
    %21 = arith.addf %18, %20 : vector<16x128xf32>
    %cst_17 = arith.constant 0.000000e+00 : f32
    %22 = vector.broadcast %cst_17 : f32 to vector<16x128xf32>
    %23 = arith.maximumf %21, %22 : vector<16x128xf32>
    %24 = arith.truncf %23 : vector<16x128xf32> to vector<16x128xbf16>
    %c0_18 = arith.constant 0 : index
    %c0_19 = arith.constant 0 : index
    %25 = vector.load %arg8[%c0_18, %c0_19] : memref<128x128xbf16, #tpu.memory_space<vmem>>, vector<128x128xbf16>
    %cst_20 = arith.constant dense<0.000000e+00> : vector<16x128xf32>
    %26 = tpu.matmul %24, %25, %cst_20 {dimension_numbers = #tpu.dot_dimension_numbers<[1], [0], [0], [1], [0, 0, 1, 1], [], []>} : vector<16x128xbf16>, vector<128x128xbf16>, vector<16x128xf32> -> vector<16x128xf32>
    %c0_21 = arith.constant 0 : index
    %c0_22 = arith.constant 0 : index
    %27 = vector.load %arg9[%c0_21, %c0_22] : memref<1x128xf32, #tpu.memory_space<vmem>>, vector<1x128xf32>
    %28 = vector.broadcast %27 : vector<1x128xf32> to vector<16x128xf32>
    %29 = arith.addf %26, %28 : vector<16x128xf32>
    %c0_23 = arith.constant 0 : index
    %c0_24 = arith.constant 0 : index
    %30 = vector.load %arg10[%c0_23, %c0_24] : memref<16x128xf32, #tpu.memory_space<vmem>>, vector<16x128xf32>
    tpu.vector_store %arg10[%c0_23, %c0_24], %29 {strides = array<i32>} : memref<16x128xf32, #tpu.memory_space<vmem>>, vector<16x128xf32>,
    return
  }
  func.func @transform_0(%arg0: i32) -> (i32, i32) {
    %c0_i32 = arith.constant 0 : i32
    %c0_i32_0 = arith.constant 0 : i32
    return %arg0, %c0_i32 : i32, i32
  }
  func.func @transform_1(%arg0: i32) -> (i32, i32) {
    %c0_i32 = arith.constant 0 : i32
    %c0_i32_0 = arith.constant 0 : i32
    %c0_i32_1 = arith.constant 0 : i32
    return %c0_i32, %c0_i32_0 : i32, i32
  }
  func.func @transform_2(%arg0: i32) -> (i32, i32) {
    %c0_i32 = arith.constant 0 : i32
    %c0_i32_0 = arith.constant 0 : i32
    %c0_i32_1 = arith.constant 0 : i32
    return %c0_i32, %c0_i32_0 : i32, i32
  }
  func.func @transform_3(%arg0: i32) -> (i32, i32) {
    %c0_i32 = arith.constant 0 : i32
    %c0_i32_0 = arith.constant 0 : i32
    %c0_i32_1 = arith.constant 0 : i32
    return %c0_i32, %c0_i32_0 : i32, i32
  }
  func.func @transform_4(%arg0: i32) -> (i32, i32) {
    %c0_i32 = arith.constant 0 : i32
    %c0_i32_0 = arith.constant 0 : i32
    %c0_i32_1 = arith.constant 0 : i32
    return %c0_i32, %c0_i32_0 : i32, i32
  }
  func.func @transform_5(%arg0: i32) -> (i32, i32) {
    %c0_i32 = arith.constant 0 : i32
    %c0_i32_0 = arith.constant 0 : i32
    %c0_i32_1 = arith.constant 0 : i32
    return %c0_i32, %c0_i32_0 : i32, i32
  }
  func.func @transform_6(%arg0: i32) -> (i32, i32) {
    %c0_i32 = arith.constant 0 : i32
    %c0_i32_0 = arith.constant 0 : i32
    %c0_i32_1 = arith.constant 0 : i32
    return %c0_i32, %c0_i32_0 : i32, i32
  }
  func.func @transform_7(%arg0: i32) -> (i32, i32) {
    %c0_i32 = arith.constant 0 : i32
    %c0_i32_0 = arith.constant 0 : i32
    %c0_i32_1 = arith.constant 0 : i32
    return %c0_i32, %c0_i32_0 : i32, i32
  }
  func.func @transform_8(%arg0: i32) -> (i32, i32) {
    %c0_i32 = arith.constant 0 : i32
    %c0_i32_0 = arith.constant 0 : i32
    %c0_i32_1 = arith.constant 0 : i32
    return %c0_i32, %c0_i32_0 : i32, i32
  }
  func.func @transform_9(%arg0: i32) -> (i32, i32) {
    %c0_i32 = arith.constant 0 : i32
    %c0_i32_0 = arith.constant 0 : i32
    return %arg0, %c0_i32 : i32, i32
  }
}

</mosaic_0001>

<bundles_post_ra>
// kernel: mlp_forward.1
= control target key start
LH: loop header
LB: loop body
LE: loop exit
PB: predicated region body
PF: predicated region fallthrough
CT: control target
= control target key end

     0   :  { %14 = vsyncpa [#allocation3], 0  ;;  %s4275_s0 = inlined_call_operand.vmem [shape: bf16[16,784], index: 0, kind: input, shape index: {}]   ;;  %s4276_s1 = inlined_call_operand.hbm [shape: bf16[784,512], index: 1, kind: input, shape index: {}]   ;;  %s4277_s2 = inlined_call_operand.vmem [shape: f32[1,512], index: 2, kind: input, shape index: {}]   ;;  %s4278_s3 = inlined_call_operand.hbm [shape: bf16[512,256], index: 3, kind: input, shape index: {}]   ;;  %s4279_s4 = inlined_call_operand.vmem [shape: f32[1,256], index: 4, kind: input, shape index: {}]   ;;  %s4280_s5 = inlined_call_operand.hbm [shape: bf16[256,128], index: 5, kind: input, shape index: {}]   ;;  %s4281_s6 = inlined_call_operand.hbm [shape: f32[1,128], index: 6, kind: input, shape index: {}]   ;;  %s4282_s7 = inlined_call_operand.vmem [shape: bf16[128,128], index: 7, kind: input, shape index: {}]   ;;  %s4283_s8 = inlined_call_operand.vmem [shape: f32[1,128], index: 8, kind: input, shape index: {}]   ;;  %s4284_s9 = inlined_call_operand.vmem [shape: f32[16,128], index: 9, kind: output, shape index: {}]  }
   0x1   :  { %15 = vsyncpa [#allocation5], 0  ;;  %s38_s11 = sshll.u32 %s4278_s3, 4  ;;  %s39_s11 = int_to_ptr.hbm [resolvable:$true] %s38_s11 }
   0x2   :  { %16 = vsyncpa [#allocation8], 0  ;;  %s4066_s12 = smov [#allocation4]   ;;  %s23_s16 = sshll.u32 %s4276_s1, 4  ;;  %s24_s16 = int_to_ptr.hbm [resolvable:$true] %s23_s16 }
   0x3   :  { %s40_s13 = sshll.u32 %s4066_s12, 4  ;;  %s4067_s17 = smov 128   ;;  %s41_s13 = int_to_ptr.vmem [resolvable:$true] %s40_s13 }
   0x4   :  { %s4068_s18 = smov 8   ;;  %s4069_s19 = smov [#allocation2]  }
   0x5   :  { %46 = dma.hbm_to_vmem [thread:$0]  %s39_s11, 8192, %s41_s13, [#allocation5], %s4067_s17, %s4067_s17, %s4068_s18  }
   0x6   :  { %s25_s20 = sshll.u32 %s4069_s19, 4  ;;  %s4070_s21 = smov 256   ;;  %s26_s20 = int_to_ptr.vmem [resolvable:$true] %s25_s20 }
   0x7   :  { %s4071_s22 = smov 16   ;;  %s53_s24 = sshll.u32 %s4280_s5, 4  ;;  %s54_s24 = int_to_ptr.hbm [resolvable:$true] %s53_s24 }
   0x8   :  { %31 = dma.hbm_to_vmem [thread:$0]  %s24_s16, 25088, %s26_s20, [#allocation3], %s4070_s21, %s4070_s21, %s4071_s22  }
   0x9   :  { %s4072_s25 = smov [#allocation6]   ;;  %s67_s28 = sshll.u32 %s4281_s6, 4  ;;  %s68_s28 = int_to_ptr.hbm [resolvable:$true] %s67_s28 }
   0xa   :  { %s55_s26 = sshll.u32 %s4072_s25, 4  ;;  %s4073_s29 = smov 64   ;;  %s56_s26 = int_to_ptr.vmem [resolvable:$true] %s55_s26 }
   0xb   :  { %s4074_s30 = smov 4   ;;  %s4075_s10 = smov [#allocation7]  }
   0xc   :  { %61 = dma.hbm_to_vmem [thread:$0]  %s54_s24, 2048, %s56_s26, [#allocation5], %s4073_s29, %s4073_s29, %s4074_s30  }
   0xd   :  { %s69_s11 = sshll.u32 %s4075_s10, 4  ;;  %s70_s11 = int_to_ptr.vmem [resolvable:$true] %s69_s11 }
   0xe   :  { %72 = dma.hbm_to_vmem [thread:$0]  %s68_s28, 16, %s70_s11, [#allocation8]  }
   0xf   :  { %4060 = dma.done.wait [#allocation3], 25088  }
  0x10   :  { %4061 = vsyncadd [#allocation3], 4294942208 }
  0x11   :  { %4062 = dma.done.wait [#allocation5], 10240  }
  0x12   :  { %4063 = vsyncadd [#allocation5], 4294957056 }
  0x13   :  { %4064 = dma.done.wait [#allocation8], 16  }
  0x14   :  { %4065 = vsyncadd [#allocation8], 4294967280  ;;  %v2635_v0 = vld [vmem:[#allocation2 + $0xe0] sm:$0xf]  ;;  %v3698_v1 = vld [vmem:[#allocation2 + $0xec] sm:$0xf0] }
  0x15   :  { %v2763_v2 = vld [vmem:[#allocation2 + $0x1e0] sm:$0xf]  ;;  %v2636_v3 = vor.u32 %v3698_v1, %v2635_v0  ;;  %v3730_v4 = vld [vmem:[#allocation2 + $0x1ec] sm:$0xf0]  ;;  %vm1323_vm0 = vcmask 130048  }
  0x16   :  { %v2891_v5 = vld [vmem:[#allocation2 + $0x2e0] sm:$0xf]  ;;  %v3762_v6 = vld [vmem:[#allocation2 + $0x2ec] sm:$0xf0]  ;;  %v2764_v7 = vor.u32 %v3730_v4, %v2763_v2 }
  0x17   :  { %v2892_v8 = vor.u32 %v3762_v6, %v2891_v5  ;;  %v3019_v9 = vld [vmem:[#allocation2 + $0x3e0] sm:$0xf]  ;;  %v3794_v10 = vld [vmem:[#allocation2 + $0x3ec] sm:$0xf0]  ;;  %1327 = vmatpush.bf16.msra.mxu0 %v2636_v3 }
  0x18   :  { %v2619_v11 = vld [vmem:[#allocation2 + $0xc0] sm:$0xf]  ;;  %v3020_v12 = vor.u32 %v3794_v10, %v3019_v9  ;;  %v3694_v13 = vld [vmem:[#allocation2 + $0xcc] sm:$0xf0]  ;;  %1341 = vmatpush.bf16.msra.mxu1 %v2764_v7 }
  0x19   :  { %v2747_v14 = vld [vmem:[#allocation2 + $0x1c0] sm:$0xf]  ;;  %v3726_v15 = vld [vmem:[#allocation2 + $0x1cc] sm:$0xf0]  ;;  %1355 = vmatpush.bf16.msra.mxu2 %v2892_v8  ;;  %v2620_v16 = vor.u32 %v3694_v13, %v2619_v11 }
  0x1a   :  { %v2748_v17 = vor.u32 %v3726_v15, %v2747_v14  ;;  %v2875_v18 = vld [vmem:[#allocation2 + $0x2c0] sm:$0xf]  ;;  %v3758_v19 = vld [vmem:[#allocation2 + $0x2cc] sm:$0xf0]  ;;  %1369 = vmatpush.bf16.msra.mxu3 %v3020_v12 }
  0x1b   :  { %v3003_v20 = vld [vmem:[#allocation2 + $0x3c0] sm:$0xf]  ;;  %v2876_v21 = vor.u32 %v3758_v19, %v2875_v18  ;;  %v3790_v22 = vld [vmem:[#allocation2 + $0x3cc] sm:$0xf0]  ;;  %1328 = vmatpush.bf16.msra.mxu0 %v2620_v16 }
  0x1c   :  { %v2603_v23 = vld [vmem:[#allocation2 + $0xa0] sm:$0xf]  ;;  %v3690_v24 = vld [vmem:[#allocation2 + $0xac] sm:$0xf0]  ;;  %v3004_v25 = vor.u32 %v3790_v22, %v3003_v20  ;;  %1342 = vmatpush.bf16.msra.mxu1 %v2748_v17 }
  0x1d   :  { %v2731_v26 = vld [vmem:[#allocation2 + $0x1a0] sm:$0xf]  ;;  %v3722_v27 = vld [vmem:[#allocation2 + $0x1ac] sm:$0xf0]  ;;  %v2604_v29 = vor.u32 %v3690_v24, %v2603_v23  ;;  %1356 = vmatpush.bf16.msra.mxu2 %v2876_v21 }
  0x1e   :  { %v2859_v28 = vld [vmem:[#allocation2 + $0x2a0] sm:$0xf]  ;;  %v3754_v30 = vld [vmem:[#allocation2 + $0x2ac] sm:$0xf0]  ;;  %v2732_v33 = vor.u32 %v3722_v27, %v2731_v26  ;;  %1370 = vmatpush.bf16.msra.mxu3 %v3004_v25 }
  0x1f   :  { %v2987_v31 = vld [vmem:[#allocation2 + $0x3a0] sm:$0xf]  ;;  %v3786_v32 = vld [vmem:[#allocation2 + $0x3ac] sm:$0xf0]  ;;  %v2860_v34 = vor.u32 %v3754_v30, %v2859_v28  ;;  %1329 = vmatpush.bf16.msra.mxu0 %v2604_v29 }
  0x20   :  { %v2587_v35 = vld [vmem:[#allocation2 + $0x80] sm:$0xf]  ;;  %v3686_v36 = vld [vmem:[#allocation2 + $0x8c] sm:$0xf0]  ;;  %v2988_v38 = vor.u32 %v3786_v32, %v2987_v31  ;;  %1343 = vmatpush.bf16.msra.mxu1 %v2732_v33  ;;  %v3696_v32 = vld [vmem:[#allocation2 + $0xe4] sm:$0xf] }
  0x21   :  { %v2715_v37 = vld [vmem:[#allocation2 + $0x180] sm:$0xf]  ;;  %v3718_v39 = vld [vmem:[#allocation2 + $0x18c] sm:$0xf0]  ;;  %v2588_v44 = vor.u32 %v3686_v36, %v2587_v35  ;;  %1357 = vmatpush.bf16.msra.mxu2 %v2860_v34  ;;  %v2637_v33 = vld [vmem:[#allocation2 + $0xf0] sm:$0xf0] }
  0x22   :  { %v2843_v40 = vld [vmem:[#allocation2 + $0x280] sm:$0xf]  ;;  %v3750_v41 = vld [vmem:[#allocation2 + $0x28c] sm:$0xf0]  ;;  %v2716_v45 = vor.u32 %v3718_v39, %v2715_v37  ;;  %1371 = vmatpush.bf16.msra.mxu3 %v2988_v38  ;;  %v2503_v34 = vld [vmem:[%s4275_s0 + $0x8] sm:$0xf] }
  0x23   :  { %v2971_v42 = vld [vmem:[#allocation2 + $0x380] sm:$0xf]  ;;  %v3782_v43 = vld [vmem:[#allocation2 + $0x38c] sm:$0xf0]  ;;  %v2844_v46 = vor.u32 %v3750_v41, %v2843_v40  ;;  %1330 = vmatpush.bf16.msra.mxu0 %v2588_v44  ;;  %v3665_v36 = vld [vmem:[%s4275_s0 + $0x20] sm:$0xf0] }
  0x24   :  { %v2571_v47 = vld [vmem:[#allocation2 + $0x60] sm:$0xf]  ;;  %v3682_v48 = vld [vmem:[#allocation2 + $0x6c] sm:$0xf0]  ;;  %v2972_v50 = vor.u32 %v3782_v43, %v2971_v42  ;;  %1344 = vmatpush.bf16.msra.mxu1 %v2716_v45  ;;  %v3728_v41 = vld [vmem:[#allocation2 + $0x1e4] sm:$0xf] }
  0x25   :  { %v2699_v49 = vld [vmem:[#allocation2 + $0x160] sm:$0xf]  ;;  %v3714_v51 = vld [vmem:[#allocation2 + $0x16c] sm:$0xf0]  ;;  %v2572_v56 = vor.u32 %v3682_v48, %v2571_v47  ;;  %1358 = vmatpush.bf16.msra.mxu2 %v2844_v46  ;;  %v3664_v43 = vld [vmem:[%s4275_s0 + $0x18] sm:$0xf0] }
  0x26   :  { %v2827_v52 = vld [vmem:[#allocation2 + $0x260] sm:$0xf]  ;;  %v3746_v53 = vld [vmem:[#allocation2 + $0x26c] sm:$0xf0]  ;;  %v2700_v57 = vor.u32 %v3714_v51, %v2699_v49  ;;  %1372 = vmatpush.bf16.msra.mxu3 %v2972_v50  ;;  %v2765_v46 = vld [vmem:[#allocation2 + $0x1f0] sm:$0xf0]  ;;  %v2640_v50 = vor.u32 %v3696_v32, %v2637_v33 }
  0x27   :  { %v2955_v54 = vld [vmem:[#allocation2 + $0x360] sm:$0xf]  ;;  %v3778_v55 = vld [vmem:[#allocation2 + $0x36c] sm:$0xf0]  ;;  %v2828_v58 = vor.u32 %v3746_v53, %v2827_v52  ;;  %1331 = vmatpush.bf16.msra.mxu0 %v2572_v56  ;;  %v3662_v47 = vld [vmem:[%s4275_s0 + $0xc] sm:$0xf] }
  0x28   :  { %v2555_v59 = vld [vmem:[#allocation2 + $0x40] sm:$0xf]  ;;  %v3678_v60 = vld [vmem:[#allocation2 + $0x4c] sm:$0xf0]  ;;  %v2956_v62 = vor.u32 %v3778_v55, %v2955_v54  ;;  %1345 = vmatpush.bf16.msra.mxu1 %v2700_v57  ;;  %v2505_v48 = vld [vmem:[%s4275_s0 + $0x24] sm:$0xf0]  ;;  %v4156_v54 = vor.u32 %v3665_v36, %v2503_v34 }
  0x29   :  { %v2683_v61 = vld [vmem:[#allocation2 + $0x140] sm:$0xf]  ;;  %v3710_v63 = vld [vmem:[#allocation2 + $0x14c] sm:$0xf0]  ;;  %v2556_v4 = vor.u32 %v3678_v60, %v2555_v59  ;;  %1359 = vmatpush.bf16.msra.mxu2 %v2828_v58  ;;  %v3692_v57 = vld [vmem:[#allocation2 + $0xc4] sm:$0xf]  ;;  %v4160_v60 = vor.u32 %v3662_v47, %v2505_v48 }
  0x2a   :  { %v2811_v0 = vld [vmem:[#allocation2 + $0x240] sm:$0xf]  ;;  %v3742_v1 = vld [vmem:[#allocation2 + $0x24c] sm:$0xf0]  ;;  %v2684_v6 = vor.u32 %v3710_v63, %v2683_v61  ;;  %1373 = vmatpush.bf16.msra.mxu3 %v2956_v62  ;;  %v2621_v58 = vld [vmem:[#allocation2 + $0xd0] sm:$0xf0]  ;;  %v2768_v63 = vor.u32 %v3728_v41, %v2765_v46 }
  0x2b   :  { %v2939_v2 = vld [vmem:[#allocation2 + $0x340] sm:$0xf]  ;;  %v3774_v3 = vld [vmem:[#allocation2 + $0x34c] sm:$0xf0]  ;;  %v2812_v7 = vor.u32 %v3742_v1, %v2811_v0  ;;  %1332 = vmatpush.bf16.msra.mxu0 %v2556_v4  ;;  %v3661_v61 = vld [vmem:[%s4275_s0 + $0x4] sm:$0xf]  ;;  %v2624_v4 = vor.u32 %v3692_v57, %v2621_v58 }
  0x2c   :  { %v2539_v5 = vld [vmem:[#allocation2 + $0x20] sm:$0xf]  ;;  %v3674_v8 = vld [vmem:[#allocation2 + $0x2c] sm:$0xf0]  ;;  %v2940_v11 = vor.u32 %v3774_v3, %v2939_v2  ;;  %1346 = vmatpush.bf16.msra.mxu1 %v2684_v6  ;;  %v3724_v1 = vld [vmem:[#allocation2 + $0x1c4] sm:$0xf] }
  0x2d   :  { %v2667_v9 = vld [vmem:[#allocation2 + $0x120] sm:$0xf]  ;;  %v3706_v10 = vld [vmem:[#allocation2 + $0x12c] sm:$0xf0]  ;;  %v2540_v18 = vor.u32 %v3674_v8, %v2539_v5  ;;  %1360 = vmatpush.bf16.msra.mxu2 %v2812_v7  ;;  %v2749_v2 = vld [vmem:[#allocation2 + $0x1d0] sm:$0xf0] }
  0x2e   :  { %v2795_v12 = vld [vmem:[#allocation2 + $0x220] sm:$0xf]  ;;  %v3738_v13 = vld [vmem:[#allocation2 + $0x22c] sm:$0xf0]  ;;  %v2668_v23 = vor.u32 %v3706_v10, %v2667_v9  ;;  %1374 = vmatpush.bf16.msra.mxu3 %v2940_v11  ;;  %v3688_v10 = vld [vmem:[#allocation2 + $0xa4] sm:$0xf] }
  0x2f   :  { %v2923_v14 = vld [vmem:[#allocation2 + $0x320] sm:$0xf]  ;;  %v3770_v15 = vld [vmem:[#allocation2 + $0x32c] sm:$0xf0]  ;;  %v2796_v24 = vor.u32 %v3738_v13, %v2795_v12  ;;  %1333 = vmatpush.bf16.msra.mxu0 %v2540_v18  ;;  %v2605_v11 = vld [vmem:[#allocation2 + $0xb0] sm:$0xf0]  ;;  %v2752_v12 = vor.u32 %v3724_v1, %v2749_v2 }
  0x30   :  { %v2523_v16 = vld [vmem:[#allocation2] sm:$0xf]  ;;  %v3670_v17 = vld [vmem:[#allocation2 + $0xc] sm:$0xf0]  ;;  %v2924_v28 = vor.u32 %v3770_v15, %v2923_v14  ;;  %1347 = vmatpush.bf16.msra.mxu1 %v2668_v23  ;;  %v3720_v14 = vld [vmem:[#allocation2 + $0x1a4] sm:$0xf] }
  0x31   :  { %v2651_v19 = vld [vmem:[#allocation2 + $0x100] sm:$0xf]  ;;  %v3702_v20 = vld [vmem:[#allocation2 + $0x10c] sm:$0xf0]  ;;  %v2524_v35 = vor.u32 %v3670_v17, %v2523_v16  ;;  %1361 = vmatpush.bf16.msra.mxu2 %v2796_v24  ;;  %v2733_v15 = vld [vmem:[#allocation2 + $0x1b0] sm:$0xf0]  ;;  %v2608_v17 = vor.u32 %v3688_v10, %v2605_v11 }
  0x32   :  { %v2779_v21 = vld [vmem:[#allocation2 + $0x200] sm:$0xf]  ;;  %v3734_v22 = vld [vmem:[#allocation2 + $0x20c] sm:$0xf0]  ;;  %v2652_v39 = vor.u32 %v3702_v20, %v2651_v19  ;;  %1375 = vmatpush.bf16.msra.mxu3 %v2924_v28  ;;  %v2589_v23 = vld [vmem:[#allocation2 + $0x90] sm:$0xf0]  ;;  %v2736_v24 = vor.u32 %v3720_v14, %v2733_v15 }
  0x33   :  { %v2907_v25 = vld [vmem:[#allocation2 + $0x300] sm:$0xf]  ;;  %v3766_v26 = vld [vmem:[#allocation2 + $0x30c] sm:$0xf0]  ;;  %v2780_v40 = vor.u32 %v3734_v22, %v2779_v21  ;;  %1334 = vmatpush.bf16.msra.mxu0 %v2524_v35  ;;  %v3684_v22 = vld [vmem:[#allocation2 + $0x84] sm:$0xf] }
  0x34   :  { %v3147_v27 = vld [vmem:[#allocation2 + $0x4e0] sm:$0xf]  ;;  %v3826_v29 = vld [vmem:[#allocation2 + $0x4ec] sm:$0xf0]  ;;  %v2908_v44 = vor.u32 %v3766_v26, %v2907_v25  ;;  %1348 = vmatpush.bf16.msra.mxu1 %v2652_v39  ;;  %v3716_v26 = vld [vmem:[#allocation2 + $0x184] sm:$0xf] }
  0x35   :  { %v3275_v30 = vld [vmem:[#allocation2 + $0x5e0] sm:$0xf]  ;;  %v3858_v31 = vld [vmem:[#allocation2 + $0x5ec] sm:$0xf0]  ;;  %v3148_v45 = vor.u32 %v3826_v29, %v3147_v27  ;;  %1362 = vmatpush.bf16.msra.mxu2 %v2780_v40  ;;  %v2717_v27 = vld [vmem:[#allocation2 + $0x190] sm:$0xf0]  ;;  %v2592_v29 = vor.u32 %v3684_v22, %v2589_v23 }
  0x36   :  { %v3291_v37 = vld [vmem:[#allocation2 + $0x600] sm:$0xf]  ;;  %v3862_v38 = vld [vmem:[#allocation2 + $0x60c] sm:$0xf0]  ;;  %v3276_v49 = vor.u32 %v3858_v31, %v3275_v30  ;;  %1376 = vmatpush.bf16.msra.mxu3 %v2908_v44  ;;  %v3680_v34 = vld [vmem:[#allocation2 + $0x64] sm:$0xf] }
  0x37   :  { %v2495_v42 = vld [vmem:[%s4275_s0] sm:$0xf]  ;;  %v3822_v52 = vld [vmem:[#allocation2 + $0x4cc] sm:$0xf0]  ;;  %v3292_v59 = vor.u32 %v3862_v38, %v3291_v37  ;;  %1383 = vmatpush.bf16.msrb.mxu0 %v3148_v45  ;;  %v2573_v35 = vld [vmem:[#allocation2 + $0x70] sm:$0xf0]  ;;  %v2720_v38 = vor.u32 %v3716_v26, %v2717_v27 }
  0x38   :  { %v3131_v51 = vld [vmem:[#allocation2 + $0x4c0] sm:$0xf]  ;;  %v4158_v55 = vor.u32 %v3664_v43, %v2495_v42  ;;  %v3854_v56 = vld [vmem:[#allocation2 + $0x5cc] sm:$0xf0]  ;;  %1397 = vmatpush.bf16.msrb.mxu1 %v3276_v49  ;;  %1363 = vmatmul.bf16.vlgmr.msra.gmra.mxu2 %v4156_v54  ;;  %v2519_v36 = vld [vmem:[%s4275_s0 + $0x18] sm:$0xf]  ;;  %v2576_v43 = vor.u32 %v3680_v34, %v2573_v35 }
  0x39   :  { %v3259_v53 = vld [vmem:[#allocation2 + $0x5c0] sm:$0xf]  ;;  %v3132_v0 = vor.u32 %v3822_v52, %v3131_v51  ;;  %v3818_v6 = vld [vmem:[#allocation2 + $0x4ac] sm:$0xf0]  ;;  %1418 = vmatpush.bf16.msrb.mxu2 %v3292_v59  ;;  %1377 = vmatmul.bf16.vlgmr.msra.gmra.mxu3 %v4160_v60  ;;  %v3667_v37 = vld [vmem:[%s4275_s0 + $0x30] sm:$0xf0] }
  0x3a   :  { %v2497_v62 = vld [vmem:[%s4275_s0 + $0x1c] sm:$0xf0]  ;;  %1425 = vmatpush.bf16.msrb.mxu3 %v2640_v50  ;;  %v3260_v3 = vor.u32 %v3854_v56, %v3259_v53  ;;  %1335 = vmatmul.bf16.vlgmr.msra.gmra.mxu0 %v4158_v55  ;;  %v3850_v9 = vld [vmem:[#allocation2 + $0x5ac] sm:$0xf0]  ;;  %v3712_v40 = vld [vmem:[#allocation2 + $0x164] sm:$0xf]  ;;  %v4180_v50 = vor.u32 %v3667_v37, %v2519_v36 }
  0x3b   :  { %v3115_v5 = vld [vmem:[#allocation2 + $0x4a0] sm:$0xf]  ;;  %v4170_v8 = vor.u32 %v3661_v61, %v2497_v62  ;;  %1384 = vmatpush.bf16.msrb.mxu0 %v3132_v0  ;;  %v3814_v19 = vld [vmem:[#allocation2 + $0x48c] sm:$0xf0]  ;;  %v2701_v41 = vld [vmem:[#allocation2 + $0x170] sm:$0xf0] }
  0x3c   :  { %v3243_v7 = vld [vmem:[#allocation2 + $0x5a0] sm:$0xf]  ;;  %v3116_v13 = vor.u32 %v3818_v6, %v3115_v5  ;;  %1398 = vmatpush.bf16.msrb.mxu1 %v3260_v3  ;;  %v3846_v21 = vld [vmem:[#allocation2 + $0x58c] sm:$0xf0]  ;;  %v3676_v48 = vld [vmem:[#allocation2 + $0x44] sm:$0xf]  ;;  %v2704_v51 = vor.u32 %v3712_v40, %v2701_v41 }
  0x3d   :  { %1439 = vmatpush.bf16.msra.mxu2 %v2768_v63  ;;  %v3244_v16 = vor.u32 %v3850_v9, %v3243_v7  ;;  %v3099_v18 = vld [vmem:[#allocation2 + $0x480] sm:$0xf]  ;;  %1349 = vmatmul.bf16.vlgmr.msra.gmra.mxu1 %v4170_v8  ;;  %v3810_v31 = vld [vmem:[#allocation2 + $0x46c] sm:$0xf0]  ;;  %v2557_v49 = vld [vmem:[#allocation2 + $0x50] sm:$0xf0] }
  0x3e   :  { %1426 = vmatpush.bf16.msrb.mxu3 %v2624_v4  ;;  %v3227_v20 = vld [vmem:[#allocation2 + $0x580] sm:$0xf]  ;;  %v3100_v25 = vor.u32 %v3814_v19, %v3099_v18  ;;  %v3842_v33 = vld [vmem:[#allocation2 + $0x56c] sm:$0xf0]  ;;  %v3708_v53 = vld [vmem:[#allocation2 + $0x144] sm:$0xf]  ;;  %v2560_v58 = vor.u32 %v3676_v48, %v2557_v49 }
  0x3f   :  { %1385 = vmatpush.bf16.msrb.mxu0 %v3116_v13  ;;  %v3228_v28 = vor.u32 %v3846_v21, %v3227_v20  ;;  %v3083_v30 = vld [vmem:[#allocation2 + $0x460] sm:$0xf]  ;;  %v3806_v45 = vld [vmem:[#allocation2 + $0x44c] sm:$0xf0]  ;;  %v2685_v56 = vld [vmem:[#allocation2 + $0x150] sm:$0xf0] }
  0x40   :  { %1399 = vmatpush.bf16.msrb.mxu1 %v3244_v16  ;;  %v3211_v32 = vld [vmem:[#allocation2 + $0x560] sm:$0xf]  ;;  %v3084_v39 = vor.u32 %v3810_v31, %v3083_v30  ;;  %v3838_v47 = vld [vmem:[#allocation2 + $0x54c] sm:$0xf0]  ;;  %v3672_v0 = vld [vmem:[#allocation2 + $0x24] sm:$0xf]  ;;  %v2688_v4 = vor.u32 %v3708_v53, %v2685_v56 }
  0x41   :  { %1440 = vmatpush.bf16.msra.mxu2 %v2752_v12  ;;  %v3212_v42 = vor.u32 %v3842_v33, %v3211_v32  ;;  %v3067_v44 = vld [vmem:[#allocation2 + $0x440] sm:$0xf]  ;;  %v3802_v61 = vld [vmem:[#allocation2 + $0x42c] sm:$0xf0]  ;;  %v2541_v1 = vld [vmem:[#allocation2 + $0x30] sm:$0xf0] }
  0x42   :  { %1427 = vmatpush.bf16.msrb.mxu3 %v2608_v17  ;;  %v3195_v46 = vld [vmem:[#allocation2 + $0x540] sm:$0xf]  ;;  %v3068_v52 = vor.u32 %v3806_v45, %v3067_v44  ;;  %v3834_v63 = vld [vmem:[#allocation2 + $0x52c] sm:$0xf0]  ;;  %v3704_v2 = vld [vmem:[#allocation2 + $0x124] sm:$0xf]  ;;  %v2544_v11 = vor.u32 %v3672_v0, %v2541_v1 }
  0x43   :  { %1386 = vmatpush.bf16.msrb.mxu0 %v3100_v25  ;;  %v3196_v57 = vor.u32 %v3838_v47, %v3195_v46  ;;  %v3051_v59 = vld [vmem:[#allocation2 + $0x420] sm:$0xf]  ;;  %v2669_v3 = vld [vmem:[#allocation2 + $0x130] sm:$0xf0]  ;;  %v3798_v7 = vld [vmem:[#allocation2 + $0x40c] sm:$0xf0] }
  0x44   :  { %1400 = vmatpush.bf16.msrb.mxu1 %v3228_v28  ;;  %v3179_v62 = vld [vmem:[#allocation2 + $0x520] sm:$0xf]  ;;  %v3052_v5 = vor.u32 %v3802_v61, %v3051_v59  ;;  %v3830_v12 = vld [vmem:[#allocation2 + $0x50c] sm:$0xf0]  ;;  %v3668_v13 = vld [vmem:[#allocation2 + $0x4] sm:$0xf]  ;;  %v2672_v21 = vor.u32 %v3704_v2, %v2669_v3 }
  0x45   :  { %1441 = vmatpush.bf16.msra.mxu2 %v2736_v24  ;;  %v3035_v6 = vld [vmem:[#allocation2 + $0x400] sm:$0xf]  ;;  %v3180_v10 = vor.u32 %v3834_v63, %v3179_v62  ;;  %v2525_v14 = vld [vmem:[#allocation2 + $0x10] sm:$0xf0]  ;;  %v3760_v15 = vld [vmem:[#allocation2 + $0x2e4] sm:$0xf] }
  0x46   :  { %1428 = vmatpush.bf16.msrb.mxu3 %v2592_v29  ;;  %v3163_v9 = vld [vmem:[#allocation2 + $0x500] sm:$0xf]  ;;  %v2893_v16 = vld [vmem:[#allocation2 + $0x2f0] sm:$0xf0]  ;;  %v3792_v17 = vld [vmem:[#allocation2 + $0x3e4] sm:$0xf]  ;;  %v3036_v22 = vor.u32 %v3798_v7, %v3035_v6  ;;  %v2528_v27 = vor.u32 %v3668_v13, %v2525_v14 }
  0x47   :  { %1387 = vmatpush.bf16.msrb.mxu0 %v3084_v39  ;;  %v3021_v18 = vld [vmem:[#allocation2 + $0x3f0] sm:$0xf0]  ;;  %v3824_v19 = vld [vmem:[#allocation2 + $0x4e4] sm:$0xf]  ;;  %v2511_v23 = vld [vmem:[%s4275_s0 + $0x10] sm:$0xf]  ;;  %v3164_v26 = vor.u32 %v3830_v12, %v3163_v9  ;;  %v2896_v31 = vor.u32 %v3760_v15, %v2893_v16 }
  0x48   :  { %1401 = vmatpush.bf16.msrb.mxu1 %v3212_v42  ;;  %3305 = vmatmul.msk.bf16.vlgmr.msrb.gmra.mxu2 %vm1323_vm0, %v4180_v50  ;;  %v3149_v20 = vld [vmem:[#allocation2 + $0x4f0] sm:$0xf0]  ;;  %v3666_v24 = vld [vmem:[%s4275_s0 + $0x28] sm:$0xf0]  ;;  %v3700_v25 = vld [vmem:[#allocation2 + $0x104] sm:$0xf]  ;;  %v3024_v32 = vor.u32 %v3792_v17, %v3021_v18 }
  0x49   :  { %1442 = vmatpush.bf16.msra.mxu2 %v2720_v38  ;;  %v2653_v28 = vld [vmem:[#allocation2 + $0x110] sm:$0xf0]  ;;  %v2513_v30 = vld [vmem:[%s4275_s0 + $0x2c] sm:$0xf0]  ;;  %v3856_v33 = vld [vmem:[#allocation2 + $0x5e4] sm:$0xf]  ;;  %v3152_v36 = vor.u32 %v3824_v19, %v3149_v20  ;;  %v4196_v37 = vor.u32 %v3666_v24, %v2511_v23 }
  0x4a   :  { %1429 = vmatpush.bf16.msrb.mxu3 %v2576_v43  ;;  %v3663_v29 = vld [vmem:[%s4275_s0 + $0x14] sm:$0xf]  ;;  %v3756_v35 = vld [vmem:[#allocation2 + $0x2c4] sm:$0xf]  ;;  %v2656_v41 = vor.u32 %v3700_v25, %v2653_v28 }
  0x4b   :  { %1388 = vmatpush.bf16.msrb.mxu0 %v3068_v52  ;;  %v3277_v34 = vld [vmem:[#allocation2 + $0x5f0] sm:$0xf0]  ;;  %v3788_v39 = vld [vmem:[#allocation2 + $0x3c4] sm:$0xf]  ;;  %v4198_v42 = vor.u32 %v3663_v29, %v2513_v30 }
  0x4c   :  { %1402 = vmatpush.bf16.msrb.mxu1 %v3196_v57  ;;  %v2877_v38 = vld [vmem:[#allocation2 + $0x2d0] sm:$0xf0]  ;;  %v3820_v43 = vld [vmem:[#allocation2 + $0x4c4] sm:$0xf]  ;;  %v3280_v45 = vor.u32 %v3856_v33, %v3277_v34 }
  0x4d   :  { %1443 = vmatpush.bf16.msra.mxu2 %v2704_v51  ;;  %v3005_v40 = vld [vmem:[#allocation2 + $0x3d0] sm:$0xf0]  ;;  %v2880_v46 = vor.u32 %v3756_v35, %v2877_v38  ;;  %v3852_v48 = vld [vmem:[#allocation2 + $0x5c4] sm:$0xf] }
  0x4e   :  { %1430 = vmatpush.bf16.msrb.mxu3 %v2560_v58  ;;  %v3133_v44 = vld [vmem:[#allocation2 + $0x4d0] sm:$0xf0]  ;;  %v3008_v47 = vor.u32 %v3788_v39, %v3005_v40  ;;  %v3752_v51 = vld [vmem:[#allocation2 + $0x2a4] sm:$0xf] }
  0x4f   :  { %1389 = vmatpush.bf16.msrb.mxu0 %v3052_v5  ;;  %v3261_v49 = vld [vmem:[#allocation2 + $0x5d0] sm:$0xf0]  ;;  %v3136_v52 = vor.u32 %v3820_v43, %v3133_v44  ;;  %v3784_v56 = vld [vmem:[#allocation2 + $0x3a4] sm:$0xf] }
  0x50   :  { %1403 = vmatpush.bf16.msrb.mxu1 %v3180_v10  ;;  %v2861_v53 = vld [vmem:[#allocation2 + $0x2b0] sm:$0xf0]  ;;  %v3816_v58 = vld [vmem:[#allocation2 + $0x4a4] sm:$0xf]  ;;  %v3264_v61 = vor.u32 %v3852_v48, %v3261_v49 }
  0x51   :  { %1444 = vmatpush.bf16.msra.mxu2 %v2688_v4  ;;  %v2989_v57 = vld [vmem:[#allocation2 + $0x3b0] sm:$0xf0]  ;;  %v2864_v62 = vor.u32 %v3752_v51, %v2861_v53  ;;  %v3848_v0 = vld [vmem:[#allocation2 + $0x5a4] sm:$0xf] }
  0x52   :  { %1431 = vmatpush.bf16.msrb.mxu3 %v2544_v11  ;;  %v3117_v59 = vld [vmem:[#allocation2 + $0x4b0] sm:$0xf0]  ;;  %v2992_v63 = vor.u32 %v3784_v56, %v2989_v57  ;;  %v3748_v2 = vld [vmem:[#allocation2 + $0x284] sm:$0xf] }
  0x53   :  { %1390 = vmatpush.bf16.msrb.mxu0 %v3036_v22  ;;  %v3245_v1 = vld [vmem:[#allocation2 + $0x5b0] sm:$0xf0]  ;;  %v3120_v3 = vor.u32 %v3816_v58, %v3117_v59  ;;  %v3780_v5 = vld [vmem:[#allocation2 + $0x384] sm:$0xf] }
  0x54   :  { %1404 = vmatpush.bf16.msrb.mxu1 %v3164_v26  ;;  %v2845_v4 = vld [vmem:[#allocation2 + $0x290] sm:$0xf0]  ;;  %v3812_v7 = vld [vmem:[#allocation2 + $0x484] sm:$0xf]  ;;  %v3248_v10 = vor.u32 %v3848_v0, %v3245_v1  ;;  %v2643_v0 = vld [vmem:[#allocation2 + $0xe8] sm:$0xf] }
  0x55   :  { %1445 = vmatpush.bf16.msra.mxu2 %v2672_v21  ;;  %v2973_v6 = vld [vmem:[#allocation2 + $0x390] sm:$0xf0]  ;;  %v2848_v11 = vor.u32 %v3748_v2, %v2845_v4  ;;  %v3844_v13 = vld [vmem:[#allocation2 + $0x584] sm:$0xf]  ;;  %v3699_v1 = vld [vmem:[#allocation2 + $0xf4] sm:$0xf0] }
  0x56   :  { %1432 = vmatpush.bf16.msrb.mxu3 %v2528_v27  ;;  %1391 = vmatmul.bf16.vlgmr.msrb.gmra.mxu0 %v4196_v37  ;;  %v3101_v9 = vld [vmem:[#allocation2 + $0x490] sm:$0xf0]  ;;  %v2976_v12 = vor.u32 %v3780_v5, %v2973_v6  ;;  %v3744_v15 = vld [vmem:[#allocation2 + $0x264] sm:$0xf]  ;;  %v2771_v2 = vld [vmem:[#allocation2 + $0x1e8] sm:$0xf] }
  0x57   :  { %1453 = vmatpush.bf16.msra.mxu0 %v2896_v31  ;;  %1405 = vmatmul.bf16.vlgmr.msrb.gmra.mxu1 %v4198_v42  ;;  %v3229_v14 = vld [vmem:[#allocation2 + $0x590] sm:$0xf0]  ;;  %v3104_v16 = vor.u32 %v3812_v7, %v3101_v9  ;;  %v3776_v18 = vld [vmem:[#allocation2 + $0x364] sm:$0xf]  ;;  %v3731_v4 = vld [vmem:[#allocation2 + $0x1f4] sm:$0xf0] }
  0x58   :  { %1467 = vmatpush.bf16.msra.mxu1 %v3024_v32  ;;  %v2829_v17 = vld [vmem:[#allocation2 + $0x270] sm:$0xf0]  ;;  %v3808_v20 = vld [vmem:[#allocation2 + $0x464] sm:$0xf]  ;;  %v3232_v22 = vor.u32 %v3844_v13, %v3229_v14  ;;  %v2644_v13 = vor.u32 %v3699_v1, %v2643_v0  ;;  %v2899_v14 = vld [vmem:[#allocation2 + $0x2e8] sm:$0xf] }
  0x59   :  { %1446 = vmatpush.bf16.msra.mxu2 %v2656_v41  ;;  %1433 = vmatmul.bf16.vlgmr.msrb.gmra.mxu3 %v4158_v55  ;;  %v2957_v19 = vld [vmem:[#allocation2 + $0x370] sm:$0xf0]  ;;  %v2832_v23 = vor.u32 %v3744_v15, %v2829_v17  ;;  %v3840_v25 = vld [vmem:[#allocation2 + $0x564] sm:$0xf]  ;;  %v3763_v15 = vld [vmem:[#allocation2 + $0x2f4] sm:$0xf0]  ;;  %v2772_v17 = vor.u32 %v3731_v4, %v2771_v2 }
  0x5a   :  { %1481 = vmatpush.bf16.msra.mxu3 %v3152_v36  ;;  %v3085_v21 = vld [vmem:[#allocation2 + $0x470] sm:$0xf0]  ;;  %v2960_v24 = vor.u32 %v3776_v18, %v2957_v19  ;;  %v3740_v27 = vld [vmem:[#allocation2 + $0x244] sm:$0xf]  ;;  %v3795_v19 = vld [vmem:[#allocation2 + $0x3f4] sm:$0xf0] }
  0x5b   :  { %1454 = vmatpush.bf16.msra.mxu0 %v2880_v46  ;;  %v3213_v26 = vld [vmem:[#allocation2 + $0x570] sm:$0xf0]  ;;  %v3088_v28 = vor.u32 %v3808_v20, %v3085_v21  ;;  %v3772_v30 = vld [vmem:[#allocation2 + $0x344] sm:$0xf]  ;;  %v2627_v20 = vld [vmem:[#allocation2 + $0xc8] sm:$0xf] }
  0x5c   :  { %1468 = vmatpush.bf16.msra.mxu1 %v3008_v47  ;;  %1447 = vmatmul.bf16.vlgmr.msra.gmra.mxu2 %v4170_v8  ;;  %v2813_v29 = vld [vmem:[#allocation2 + $0x250] sm:$0xf0]  ;;  %v3804_v32 = vld [vmem:[#allocation2 + $0x444] sm:$0xf]  ;;  %v3216_v34 = vor.u32 %v3840_v25, %v3213_v26  ;;  %v3695_v21 = vld [vmem:[#allocation2 + $0xd4] sm:$0xf0]  ;;  %v2900_v25 = vor.u32 %v3763_v15, %v2899_v14 }
  0x5d   :  { %1495 = vmatpush.bf16.msrb.mxu2 %v3280_v45  ;;  %v2941_v31 = vld [vmem:[#allocation2 + $0x350] sm:$0xf0]  ;;  %v2816_v35 = vor.u32 %v3740_v27, %v2813_v29  ;;  %v3836_v38 = vld [vmem:[#allocation2 + $0x544] sm:$0xf]  ;;  %v2628_v27 = vor.u32 %v3695_v21, %v2627_v20  ;;  %v3759_v29 = vld [vmem:[#allocation2 + $0x2d4] sm:$0xf0] }
  0x5e   :  { %1482 = vmatpush.bf16.msra.mxu3 %v3136_v52  ;;  %v3069_v33 = vld [vmem:[#allocation2 + $0x450] sm:$0xf0]  ;;  %v2944_v36 = vor.u32 %v3772_v30, %v2941_v31  ;;  %v3736_v40 = vld [vmem:[#allocation2 + $0x224] sm:$0xf]  ;;  %v3011_v30 = vld [vmem:[#allocation2 + $0x3c8] sm:$0xf] }
  0x5f   :  { %1455 = vmatpush.bf16.msra.mxu0 %v2864_v62  ;;  %v3197_v39 = vld [vmem:[#allocation2 + $0x550] sm:$0xf0]  ;;  %v3072_v41 = vor.u32 %v3804_v32, %v3069_v33  ;;  %v3768_v44 = vld [vmem:[#allocation2 + $0x324] sm:$0xf]  ;;  %v3791_v32 = vld [vmem:[#allocation2 + $0x3d4] sm:$0xf0] }
  0x60   :  { %1469 = vmatpush.bf16.msra.mxu1 %v2992_v63  ;;  %v2797_v43 = vld [vmem:[#allocation2 + $0x230] sm:$0xf0]  ;;  %v3800_v46 = vld [vmem:[#allocation2 + $0x424] sm:$0xf]  ;;  %v3200_v48 = vor.u32 %v3836_v38, %v3197_v39  ;;  %v2611_v33 = vld [vmem:[#allocation2 + $0xa8] sm:$0xf]  ;;  %v3012_v39 = vor.u32 %v3791_v32, %v3011_v30 }
  0x61   :  { %1496 = vmatpush.bf16.msrb.mxu2 %v3264_v61  ;;  %v2925_v45 = vld [vmem:[#allocation2 + $0x330] sm:$0xf0]  ;;  %v3832_v49 = vld [vmem:[#allocation2 + $0x524] sm:$0xf]  ;;  %v2800_v52 = vor.u32 %v3736_v40, %v2797_v43  ;;  %v3755_v43 = vld [vmem:[#allocation2 + $0x2b4] sm:$0xf0] }
  0x62   :  { %1483 = vmatpush.bf16.msra.mxu3 %v3120_v3  ;;  %v3053_v47 = vld [vmem:[#allocation2 + $0x430] sm:$0xf0]  ;;  %v2928_v53 = vor.u32 %v3768_v44, %v2925_v45  ;;  %v3732_v56 = vld [vmem:[#allocation2 + $0x204] sm:$0xf]  ;;  %v2995_v44 = vld [vmem:[#allocation2 + $0x3a8] sm:$0xf] }
  0x63   :  { %1456 = vmatpush.bf16.msra.mxu0 %v2848_v11  ;;  %v3181_v51 = vld [vmem:[#allocation2 + $0x530] sm:$0xf0]  ;;  %v3764_v58 = vld [vmem:[#allocation2 + $0x304] sm:$0xf]  ;;  %v3056_v59 = vor.u32 %v3800_v46, %v3053_v47  ;;  %v3787_v46 = vld [vmem:[#allocation2 + $0x3b4] sm:$0xf0] }
  0x64   :  { %1470 = vmatpush.bf16.msra.mxu1 %v2976_v12  ;;  %v2781_v57 = vld [vmem:[#allocation2 + $0x210] sm:$0xf0]  ;;  %v3796_v62 = vld [vmem:[#allocation2 + $0x404] sm:$0xf]  ;;  %v3184_v3 = vor.u32 %v3832_v49, %v3181_v51  ;;  %v2595_v47 = vld [vmem:[#allocation2 + $0x88] sm:$0xf] }
  0x65   :  { %1497 = vmatpush.bf16.msrb.mxu2 %v3248_v10  ;;  %v2909_v61 = vld [vmem:[#allocation2 + $0x310] sm:$0xf0]  ;;  %v3860_v5 = vld [vmem:[#allocation2 + $0x604] sm:$0xf]  ;;  %v2784_v7 = vor.u32 %v3732_v56, %v2781_v57  ;;  %v2723_v49 = vld [vmem:[#allocation2 + $0x188] sm:$0xf]  ;;  %v2996_v56 = vor.u32 %v3787_v46, %v2995_v44 }
  0x66   :  { %1484 = vmatpush.bf16.msra.mxu3 %v3104_v16  ;;  %v3037_v63 = vld [vmem:[#allocation2 + $0x410] sm:$0xf0]  ;;  %v2912_v9 = vor.u32 %v3764_v58, %v2909_v61  ;;  %v3828_v10 = vld [vmem:[#allocation2 + $0x504] sm:$0xf]  ;;  %v3027_v16 = vld [vmem:[#allocation2 + $0x3e8] sm:$0xf] }
  0x67   :  { %1457 = vmatpush.bf16.msra.mxu0 %v2832_v23  ;;  %v3293_v6 = vld [vmem:[#allocation2 + $0x610] sm:$0xf0]  ;;  %v3040_v12 = vor.u32 %v3796_v62, %v3037_v63  ;;  %v2755_v23 = vld [vmem:[#allocation2 + $0x1c8] sm:$0xf]  ;;  %v3028_v26 = vor.u32 %v3795_v19, %v3027_v16  ;;  %v3719_v51 = vld [vmem:[#allocation2 + $0x194] sm:$0xf0] }
  0x68   :  { %1471 = vmatpush.bf16.msra.mxu1 %v2960_v24  ;;  %v3165_v11 = vld [vmem:[#allocation2 + $0x510] sm:$0xf0]  ;;  %v3296_v18 = vor.u32 %v3860_v5, %v3293_v6  ;;  %v3727_v24 = vld [vmem:[#allocation2 + $0x1d4] sm:$0xf0]  ;;  %v2724_v62 = vor.u32 %v3719_v51, %v2723_v49  ;;  %v2579_v63 = vld [vmem:[#allocation2 + $0x68] sm:$0xf] }
  0x69   :  { %1498 = vmatpush.bf16.msrb.mxu2 %v3232_v22  ;;  %v3168_v22 = vor.u32 %v3828_v10, %v3165_v11  ;;  %v2756_v31 = vor.u32 %v3727_v24, %v2755_v23  ;;  %v3751_v58 = vld [vmem:[#allocation2 + $0x294] sm:$0xf0]  ;;  %v2707_v1 = vld [vmem:[#allocation2 + $0x168] sm:$0xf] }
  0x6a   :  { %1485 = vmatpush.bf16.msra.mxu3 %v3088_v28  ;;  %v2883_v28 = vld [vmem:[#allocation2 + $0x2c8] sm:$0xf]  ;;  %v3783_v61 = vld [vmem:[#allocation2 + $0x394] sm:$0xf0] }
  0x6b   :  { %1458 = vmatpush.bf16.msra.mxu0 %v2816_v35  ;;  %v2739_v35 = vld [vmem:[#allocation2 + $0x1a8] sm:$0xf]  ;;  %v2884_v38 = vor.u32 %v3759_v29, %v2883_v28  ;;  %v3683_v0 = vld [vmem:[#allocation2 + $0x74] sm:$0xf0] }
  0x6c   :  { %1472 = vmatpush.bf16.msra.mxu1 %v2944_v36  ;;  %v3723_v36 = vld [vmem:[#allocation2 + $0x1b4] sm:$0xf0]  ;;  %v2580_v5 = vor.u32 %v3683_v0, %v2579_v63  ;;  %v2835_v6 = vld [vmem:[#allocation2 + $0x268] sm:$0xf] }
  0x6d   :  { %1499 = vmatpush.bf16.msrb.mxu2 %v3216_v34  ;;  %v3691_v34 = vld [vmem:[#allocation2 + $0xb4] sm:$0xf0]  ;;  %v2740_v45 = vor.u32 %v3723_v36, %v2739_v35  ;;  %v2691_v14 = vld [vmem:[#allocation2 + $0x148] sm:$0xf] }
  0x6e   :  { %1486 = vmatpush.bf16.msra.mxu3 %v3072_v41  ;;  %v2612_v40 = vor.u32 %v3691_v34, %v2611_v33  ;;  %v2867_v41 = vld [vmem:[#allocation2 + $0x2a8] sm:$0xf]  ;;  %v3715_v2 = vld [vmem:[#allocation2 + $0x174] sm:$0xf0] }
  0x6f   :  { %1459 = vmatpush.bf16.msra.mxu0 %v2800_v52  ;;  %v2868_v52 = vor.u32 %v3755_v43, %v2867_v41  ;;  %v2708_v10 = vor.u32 %v3715_v2, %v2707_v1  ;;  %v3779_v11 = vld [vmem:[#allocation2 + $0x374] sm:$0xf0]  ;;  %v2819_v19 = vld [vmem:[#allocation2 + $0x248] sm:$0xf] }
  0x70   :  { %1473 = vmatpush.bf16.msra.mxu1 %v2928_v53  ;;  %v2851_v53 = vld [vmem:[#allocation2 + $0x288] sm:$0xf]  ;;  %v3711_v15 = vld [vmem:[#allocation2 + $0x154] sm:$0xf0] }
  0x71   :  { %1500 = vmatpush.bf16.msrb.mxu2 %v3200_v48  ;;  %v3687_v48 = vld [vmem:[#allocation2 + $0x94] sm:$0xf0]  ;;  %v2947_v21 = vld [vmem:[#allocation2 + $0x348] sm:$0xf] }
  0x72   :  { %1487 = vmatpush.bf16.msra.mxu3 %v3056_v59  ;;  %v2596_v57 = vor.u32 %v3687_v48, %v2595_v47  ;;  %v2979_v59 = vld [vmem:[#allocation2 + $0x388] sm:$0xf]  ;;  %v3743_v20 = vld [vmem:[#allocation2 + $0x254] sm:$0xf0] }
  0x73   :  { %1460 = vmatpush.bf16.msra.mxu0 %v2784_v7  ;;  %v2980_v4 = vor.u32 %v3783_v61, %v2979_v59  ;;  %v3747_v7 = vld [vmem:[#allocation2 + $0x274] sm:$0xf0]  ;;  %v2547_v24 = vld [vmem:[#allocation2 + $0x28] sm:$0xf]  ;;  %v2820_v28 = vor.u32 %v3743_v20, %v2819_v19  ;;  %v2645_v59 = vld [vmem:[#allocation2 + $0xf8] sm:$0xf0] }
  0x74   :  { %1474 = vmatpush.bf16.msra.mxu1 %v2912_v9  ;;  %v2963_v9 = vld [vmem:[#allocation2 + $0x368] sm:$0xf]  ;;  %v2836_v16 = vor.u32 %v3747_v7, %v2835_v6  ;;  %v3775_v23 = vld [vmem:[#allocation2 + $0x354] sm:$0xf0] }
  0x75   :  { %1501 = vmatpush.bf16.msrb.mxu2 %v3184_v3  ;;  %v2852_v3 = vor.u32 %v3751_v58, %v2851_v53  ;;  %v2803_v29 = vld [vmem:[#allocation2 + $0x228] sm:$0xf]  ;;  %v2948_v30 = vor.u32 %v3775_v23, %v2947_v21  ;;  %v3739_v32 = vld [vmem:[#allocation2 + $0x234] sm:$0xf0]  ;;  %v3697_v58 = vld [vmem:[#allocation2 + $0xec] sm:$0xf] }
  0x76   :  { %1488 = vmatpush.bf16.msra.mxu3 %v3040_v12  ;;  %1461 = vmatmul.bf16.vlgmr.msra.gmra.mxu0 %v4156_v54  ;;  %v2563_v12 = vld [vmem:[#allocation2 + $0x48] sm:$0xf]  ;;  %v3771_v34 = vld [vmem:[#allocation2 + $0x334] sm:$0xf0]  ;;  %v2804_v44 = vor.u32 %v3739_v32, %v2803_v29  ;;  %v2648_v6 = vor.u32 %v3697_v58, %v2645_v59  ;;  %v2757_v23 = vld [vmem:[#allocation2 + $0x1d8] sm:$0xf0] }
  0x77   :  { %1516 = vmatpush.bf16.msrb.mxu0 %v3296_v18  ;;  %1475 = vmatmul.bf16.vlgmr.msra.gmra.mxu1 %v4160_v60  ;;  %v2931_v33 = vld [vmem:[#allocation2 + $0x328] sm:$0xf]  ;;  %v3827_v43 = vld [vmem:[#allocation2 + $0x4f4] sm:$0xf0] }
  0x78   :  { %1523 = vmatpush.bf16.msrb.mxu1 %v2644_v13  ;;  %v3679_v13 = vld [vmem:[#allocation2 + $0x54] sm:$0xf0]  ;;  %v2531_v36 = vld [vmem:[#allocation2 + $0x8] sm:$0xf]  ;;  %v2932_v47 = vor.u32 %v3771_v34, %v2931_v33  ;;  %v3721_v34 = vld [vmem:[#allocation2 + $0x1ac] sm:$0xf] }
  0x79   :  { %1502 = vmatpush.bf16.msrb.mxu2 %v3168_v22  ;;  %1489 = vmatmul.bf16.vlgmr.msra.gmra.mxu3 %v4196_v37  ;;  %v2564_v18 = vor.u32 %v3679_v13, %v2563_v12  ;;  %v2692_v22 = vor.u32 %v3711_v15, %v2691_v14  ;;  %v3155_v41 = vld [vmem:[#allocation2 + $0x4e8] sm:$0xf]  ;;  %v3859_v46 = vld [vmem:[#allocation2 + $0x5f4] sm:$0xf0]  ;;  %v2629_v14 = vld [vmem:[#allocation2 + $0xd8] sm:$0xf0] }
  0x7a   :  { %1537 = vmatpush.bf16.msrb.mxu3 %v2772_v17  ;;  %v2964_v17 = vor.u32 %v3779_v11, %v2963_v9  ;;  %v2787_v49 = vld [vmem:[#allocation2 + $0x208] sm:$0xf]  ;;  %v3735_v51 = vld [vmem:[#allocation2 + $0x214] sm:$0xf0]  ;;  %v3729_v9 = vld [vmem:[#allocation2 + $0x1ec] sm:$0xf] }
  0x7b   :  { %1551 = vmatpush.bf16.msra.mxu0 %v2900_v25  ;;  %v3675_v25 = vld [vmem:[#allocation2 + $0x34] sm:$0xf0]  ;;  %v3267_v0 = vld [vmem:[#allocation2 + $0x5c8] sm:$0xf]  ;;  %v2788_v1 = vor.u32 %v3735_v51, %v2787_v49  ;;  %v3693_v11 = vld [vmem:[#allocation2 + $0xcc] sm:$0xf] }
  0x7c   :  { %1524 = vmatpush.bf16.msrb.mxu1 %v2628_v27  ;;  %1503 = vmatmul.bf16.vlgmr.msrb.gmra.mxu2 %v4198_v42  ;;  %v3707_v27 = vld [vmem:[#allocation2 + $0x134] sm:$0xf0]  ;;  %v3123_v15 = vld [vmem:[#allocation2 + $0x4a8] sm:$0xf]  ;;  %v2632_v20 = vor.u32 %v3693_v11, %v2629_v14  ;;  %v2725_v49 = vld [vmem:[#allocation2 + $0x198] sm:$0xf0] }
  0x7d   :  { %1565 = vmatpush.bf16.msra.mxu2 %v3028_v26  ;;  %v2675_v26 = vld [vmem:[#allocation2 + $0x128] sm:$0xf]  ;;  %v3823_v63 = vld [vmem:[#allocation2 + $0x4d4] sm:$0xf0]  ;;  %v3681_v51 = vld [vmem:[#allocation2 + $0x6c] sm:$0xf] }
  0x7e   :  { %1538 = vmatpush.bf16.msrb.mxu3 %v2756_v31  ;;  %v2548_v31 = vor.u32 %v3675_v25, %v2547_v24  ;;  %v2676_v35 = vor.u32 %v3707_v27, %v2675_v26  ;;  %v3855_v2 = vld [vmem:[#allocation2 + $0x5d4] sm:$0xf0]  ;;  %v3689_v24 = vld [vmem:[#allocation2 + $0xac] sm:$0xf]  ;;  %v2613_v26 = vld [vmem:[#allocation2 + $0xb8] sm:$0xf0] }
  0x7f   :  { %1552 = vmatpush.bf16.msra.mxu0 %v2884_v38  ;;  %v3671_v38 = vld [vmem:[#allocation2 + $0x14] sm:$0xf0]  ;;  %v3268_v12 = vor.u32 %v3855_v2, %v3267_v0  ;;  %v3107_v27 = vld [vmem:[#allocation2 + $0x488] sm:$0xf]  ;;  %v2616_v32 = vor.u32 %v3689_v24, %v2613_v26  ;;  %v3713_v0 = vld [vmem:[#allocation2 + $0x16c] sm:$0xf] }
  0x80   :  { %1525 = vmatpush.bf16.msrb.mxu1 %v2612_v40  ;;  %v3703_v40 = vld [vmem:[#allocation2 + $0x114] sm:$0xf0]  ;;  %v2532_v48 = vor.u32 %v3671_v38, %v2531_v36  ;;  %v3235_v29 = vld [vmem:[#allocation2 + $0x588] sm:$0xf]  ;;  %v3685_v36 = vld [vmem:[#allocation2 + $0x8c] sm:$0xf] }
  0x81   :  { %1566 = vmatpush.bf16.msra.mxu2 %v3012_v39  ;;  %v2659_v39 = vld [vmem:[#allocation2 + $0x108] sm:$0xf]  ;;  %v3839_v59 = vld [vmem:[#allocation2 + $0x554] sm:$0xf0]  ;;  %v3677_v2 = vld [vmem:[#allocation2 + $0x4c] sm:$0xf] }
  0x82   :  { %1539 = vmatpush.bf16.msrb.mxu3 %v2740_v45  ;;  %v3283_v45 = vld [vmem:[#allocation2 + $0x5e8] sm:$0xf]  ;;  %v2660_v53 = vor.u32 %v3703_v40, %v2659_v39  ;;  %v2597_v39 = vld [vmem:[#allocation2 + $0x98] sm:$0xf0]  ;;  %v3709_v11 = vld [vmem:[#allocation2 + $0x14c] sm:$0xf] }
  0x83   :  { %1553 = vmatpush.bf16.msra.mxu0 %v2868_v52  ;;  %v2915_v52 = vld [vmem:[#allocation2 + $0x308] sm:$0xf]  ;;  %v3284_v61 = vor.u32 %v3859_v46, %v3283_v45  ;;  %v2600_v46 = vor.u32 %v3685_v36, %v2597_v39  ;;  %v2693_v14 = vld [vmem:[#allocation2 + $0x158] sm:$0xf0]  ;;  %v3757_v39 = vld [vmem:[#allocation2 + $0x2cc] sm:$0xf] }
  0x84   :  { %1526 = vmatpush.bf16.msrb.mxu1 %v2596_v57  ;;  %v3767_v57 = vld [vmem:[#allocation2 + $0x314] sm:$0xf0]  ;;  %v3091_v40 = vld [vmem:[#allocation2 + $0x468] sm:$0xf]  ;;  %v2696_v24 = vor.u32 %v3709_v11, %v2693_v14  ;;  %v3029_v26 = vld [vmem:[#allocation2 + $0x3f8] sm:$0xf0] }
  0x85   :  { %1567 = vmatpush.bf16.msra.mxu2 %v2996_v56  ;;  %v3156_v56 = vor.u32 %v3827_v43, %v3155_v41  ;;  %v3811_v41 = vld [vmem:[#allocation2 + $0x474] sm:$0xf0]  ;;  %v3219_v43 = vld [vmem:[#allocation2 + $0x568] sm:$0xf]  ;;  %v3781_v11 = vld [vmem:[#allocation2 + $0x38c] sm:$0xf] }
  0x86   :  { %1540 = vmatpush.bf16.msrb.mxu3 %v2724_v62  ;;  %3306 = vmatmul.msk.bf16.vlgmr.msrb.gmra.mxu0 %vm1323_vm0, %v4180_v50  ;;  %v3139_v62 = vld [vmem:[#allocation2 + $0x4c8] sm:$0xf] }
  0x87   :  { %1554 = vmatpush.bf16.msra.mxu0 %v2852_v3  ;;  %v3299_v3 = vld [vmem:[#allocation2 + $0x608] sm:$0xf]  ;;  %v3140_v7 = vor.u32 %v3823_v63, %v3139_v62 }
  0x88   :  { %1527 = vmatpush.bf16.msrb.mxu1 %v2580_v5  ;;  %v2916_v5 = vor.u32 %v3767_v57, %v2915_v52  ;;  %v3807_v57 = vld [vmem:[#allocation2 + $0x454] sm:$0xf0]  ;;  %v3203_v58 = vld [vmem:[#allocation2 + $0x548] sm:$0xf] }
  0x89   :  { %1568 = vmatpush.bf16.msra.mxu2 %v2980_v4  ;;  %v3863_v4 = vld [vmem:[#allocation2 + $0x614] sm:$0xf0] }
  0x8a   :  { %1541 = vmatpush.bf16.msrb.mxu3 %v2708_v10  ;;  %v2773_v10 = vld [vmem:[#allocation2 + $0x1f8] sm:$0xf0]  ;;  %v3300_v13 = vor.u32 %v3863_v4, %v3299_v3  ;;  %v3204_v3 = vor.u32 %v3839_v59, %v3203_v58  ;;  %v3753_v58 = vld [vmem:[#allocation2 + $0x2ac] sm:$0xf] }
  0x8b   :  { %1555 = vmatpush.bf16.msra.mxu0 %v2836_v16  ;;  %v3819_v16 = vld [vmem:[#allocation2 + $0x4b4] sm:$0xf0]  ;;  %v2776_v19 = vor.u32 %v3729_v9, %v2773_v10  ;;  %v2565_v4 = vld [vmem:[#allocation2 + $0x58] sm:$0xf0] }
  0x8c   :  { %1528 = vmatpush.bf16.msrb.mxu1 %v2564_v18  ;;  %v3851_v18 = vld [vmem:[#allocation2 + $0x5b4] sm:$0xf0]  ;;  %v3124_v21 = vor.u32 %v3819_v16, %v3123_v15  ;;  %v3673_v15 = vld [vmem:[#allocation2 + $0x2c] sm:$0xf]  ;;  %v2549_v16 = vld [vmem:[#allocation2 + $0x38] sm:$0xf0] }
  0x8d   :  { %1569 = vmatpush.bf16.msra.mxu2 %v2964_v17  ;;  %v3251_v17 = vld [vmem:[#allocation2 + $0x5a8] sm:$0xf]  ;;  %v3835_v9 = vld [vmem:[#allocation2 + $0x534] sm:$0xf0]  ;;  %v2869_v59 = vld [vmem:[#allocation2 + $0x2b8] sm:$0xf0] }
  0x8e   :  { %1542 = vmatpush.bf16.msrb.mxu3 %v2692_v22  ;;  %v3725_v22 = vld [vmem:[#allocation2 + $0x1cc] sm:$0xf]  ;;  %v3252_v25 = vor.u32 %v3851_v18, %v3251_v17  ;;  %v3043_v18 = vld [vmem:[#allocation2 + $0x408] sm:$0xf] }
  0x8f   :  { %1556 = vmatpush.bf16.msra.mxu0 %v2820_v28  ;;  %v3815_v28 = vld [vmem:[#allocation2 + $0x494] sm:$0xf0] }
  0x90   :  { %1529 = vmatpush.bf16.msrb.mxu1 %v2548_v31  ;;  %v2760_v31 = vor.u32 %v3725_v22, %v2757_v23  ;;  %v3108_v33 = vor.u32 %v3815_v28, %v3107_v27  ;;  %v3761_v22 = vld [vmem:[#allocation2 + $0x2ec] sm:$0xf]  ;;  %v2901_v23 = vld [vmem:[#allocation2 + $0x2f8] sm:$0xf0]  ;;  %v2552_v27 = vor.u32 %v3673_v15, %v2549_v16 }
  0x91   :  { %1570 = vmatpush.bf16.msra.mxu2 %v2948_v30  ;;  %v3847_v30 = vld [vmem:[#allocation2 + $0x594] sm:$0xf0]  ;;  %v3849_v16 = vld [vmem:[#allocation2 + $0x5ac] sm:$0xf] }
  0x92   :  { %1543 = vmatpush.bf16.msrb.mxu3 %v2676_v35  ;;  %v2741_v35 = vld [vmem:[#allocation2 + $0x1b8] sm:$0xf0]  ;;  %v3236_v38 = vor.u32 %v3847_v30, %v3235_v29  ;;  %v3705_v29 = vld [vmem:[#allocation2 + $0x12c] sm:$0xf] }
  0x93   :  { %1557 = vmatpush.bf16.msra.mxu0 %v2804_v44  ;;  %v3843_v44 = vld [vmem:[#allocation2 + $0x574] sm:$0xf0]  ;;  %v2744_v45 = vor.u32 %v3721_v34, %v2741_v35  ;;  %v2677_v30 = vld [vmem:[#allocation2 + $0x138] sm:$0xf0]  ;;  %v3825_v35 = vld [vmem:[#allocation2 + $0x4ec] sm:$0xf] }
  0x94   :  { %1530 = vmatpush.bf16.msrb.mxu1 %v2532_v48  ;;  %v3717_v48 = vld [vmem:[#allocation2 + $0x18c] sm:$0xf]  ;;  %v3220_v52 = vor.u32 %v3843_v44, %v3219_v43  ;;  %v2533_v34 = vld [vmem:[#allocation2 + $0x18] sm:$0xf0] }
  0x95   :  { %1571 = vmatpush.bf16.msra.mxu2 %v2932_v47  ;;  %v3092_v47 = vor.u32 %v3811_v41, %v3091_v40  ;;  %v2885_v40 = vld [vmem:[#allocation2 + $0x2d8] sm:$0xf0]  ;;  %v2680_v41 = vor.u32 %v3705_v29, %v2677_v30  ;;  %v3789_v43 = vld [vmem:[#allocation2 + $0x3cc] sm:$0xf] }
  0x96   :  { %1544 = vmatpush.bf16.msrb.mxu3 %v2660_v53  ;;  %v2581_v53 = vld [vmem:[#allocation2 + $0x78] sm:$0xf0]  ;;  %v3809_v29 = vld [vmem:[#allocation2 + $0x46c] sm:$0xf] }
  0x97   :  { %1558 = vmatpush.bf16.msra.mxu0 %v2788_v1  ;;  %1531 = vmatmul.bf16.vlgmr.msrb.gmra.mxu1 %v4158_v55  ;;  %v2584_v62 = vor.u32 %v3681_v51, %v2581_v53  ;;  %v2709_v1 = vld [vmem:[#allocation2 + $0x178] sm:$0xf0]  ;;  %v3857_v51 = vld [vmem:[#allocation2 + $0x5ec] sm:$0xf] }
  0x98   :  { %1579 = vmatpush.bf16.msra.mxu1 %v3156_v56  ;;  %v3075_v56 = vld [vmem:[#allocation2 + $0x448] sm:$0xf]  ;;  %v2712_v10 = vor.u32 %v3713_v0, %v2709_v1  ;;  %v3013_v44 = vld [vmem:[#allocation2 + $0x3d8] sm:$0xf0]  ;;  %v3821_v53 = vld [vmem:[#allocation2 + $0x4cc] sm:$0xf] }
  0x99   :  { %1545 = vmatmul.bf16.vlgmr.msrb.gmra.mxu3 %v4170_v8  ;;  %1572 = vmatpush.bf16.msra.mxu2 %v2916_v5  ;;  %v3076_v63 = vor.u32 %v3807_v57, %v3075_v56  ;;  %v3059_v5 = vld [vmem:[#allocation2 + $0x428] sm:$0xf]  ;;  %v3016_v56 = vor.u32 %v3789_v43, %v3013_v44  ;;  %v3141_v57 = vld [vmem:[#allocation2 + $0x4d8] sm:$0xf0] }
  0x9a   :  { %1593 = vmatpush.bf16.msra.mxu3 %v3284_v61  ;;  %1559 = vmatmul.bf16.vlgmr.msra.gmra.mxu0 %v4156_v54  ;;  %v2728_v61 = vor.u32 %v3717_v48, %v2725_v49  ;;  %v2888_v49 = vor.u32 %v3757_v39, %v2885_v40  ;;  %v3144_v1 = vor.u32 %v3821_v53, %v3141_v57  ;;  %v3841_v39 = vld [vmem:[#allocation2 + $0x56c] sm:$0xf]  ;;  %v3221_v40 = vld [vmem:[#allocation2 + $0x578] sm:$0xf0] }
  0x9b   :  { %1614 = vmatpush.bf16.msrb.mxu0 %v3300_v13  ;;  %v3077_v44 = vld [vmem:[#allocation2 + $0x458] sm:$0xf0] }
  0x9c   :  { %1580 = vmatpush.bf16.msra.mxu1 %v3140_v7  ;;  %1573 = vmatmul.bf16.vlgmr.msra.gmra.mxu2 %v4160_v60  ;;  %v3187_v7 = vld [vmem:[#allocation2 + $0x528] sm:$0xf]  ;;  %v3205_v57 = vld [vmem:[#allocation2 + $0x558] sm:$0xf0] }
  0x9d   :  { %1621 = vmatpush.bf16.msrb.mxu2 %v2648_v6  ;;  %v3803_v6 = vld [vmem:[#allocation2 + $0x434] sm:$0xf0]  ;;  %v3188_v17 = vor.u32 %v3835_v9, %v3187_v7  ;;  %v3125_v7 = vld [vmem:[#allocation2 + $0x4b8] sm:$0xf0]  ;;  %v3749_v9 = vld [vmem:[#allocation2 + $0x28c] sm:$0xf] }
  0x9e   :  { %1594 = vmatpush.bf16.msra.mxu3 %v3268_v12  ;;  %v2568_v12 = vor.u32 %v3677_v2, %v2565_v4  ;;  %v3060_v13 = vor.u32 %v3803_v6, %v3059_v5  ;;  %v2872_v2 = vor.u32 %v3753_v58, %v2869_v59  ;;  %v3269_v4 = vld [vmem:[#allocation2 + $0x5d8] sm:$0xf0]  ;;  %v3817_v5 = vld [vmem:[#allocation2 + $0x4ac] sm:$0xf] }
  0x9f   :  { %1635 = vmatpush.bf16.msra.mxu0 %v2776_v19  ;;  %v3799_v19 = vld [vmem:[#allocation2 + $0x414] sm:$0xf0]  ;;  %v3128_v14 = vor.u32 %v3817_v5, %v3125_v7  ;;  %v3801_v58 = vld [vmem:[#allocation2 + $0x42c] sm:$0xf]  ;;  %v3061_v59 = vld [vmem:[#allocation2 + $0x438] sm:$0xf0] }
  0xa0   :  { %1581 = vmatpush.bf16.msra.mxu1 %v3124_v21  ;;  %v3831_v21 = vld [vmem:[#allocation2 + $0x514] sm:$0xf0]  ;;  %v3044_v28 = vor.u32 %v3799_v19, %v3043_v18  ;;  %v3813_v18 = vld [vmem:[#allocation2 + $0x48c] sm:$0xf]  ;;  %v3301_v5 = vld [vmem:[#allocation2 + $0x618] sm:$0xf0] }
  0xa1   :  { %1622 = vmatpush.bf16.msrb.mxu2 %v2632_v20  ;;  %v3171_v20 = vld [vmem:[#allocation2 + $0x508] sm:$0xf] }
  0xa2   :  { %1595 = vmatpush.bf16.msra.mxu3 %v3252_v25  ;;  %v3793_v25 = vld [vmem:[#allocation2 + $0x3ec] sm:$0xf] }
  0xa3   :  { %1636 = vmatpush.bf16.msra.mxu0 %v2760_v31  ;;  %v3172_v31 = vor.u32 %v3831_v21, %v3171_v20  ;;  %v3032_v36 = vor.u32 %v3793_v25, %v3029_v26  ;;  %v3109_v20 = vld [vmem:[#allocation2 + $0x498] sm:$0xf0]  ;;  %v3745_v21 = vld [vmem:[#allocation2 + $0x26c] sm:$0xf] }
  0xa4   :  { %1582 = vmatpush.bf16.msra.mxu1 %v3108_v33  ;;  %v3669_v33 = vld [vmem:[#allocation2 + $0xc] sm:$0xf]  ;;  %v3112_v25 = vor.u32 %v3813_v18, %v3109_v20  ;;  %v3045_v18 = vld [vmem:[#allocation2 + $0x418] sm:$0xf0] }
  0xa5   :  { %1623 = vmatpush.bf16.msrb.mxu2 %v2616_v32  ;;  %v2904_v32 = vor.u32 %v3761_v22, %v2901_v23  ;;  %v2837_v22 = vld [vmem:[#allocation2 + $0x278] sm:$0xf0]  ;;  %v3777_v23 = vld [vmem:[#allocation2 + $0x36c] sm:$0xf] }
  0xa6   :  { %1596 = vmatpush.bf16.msra.mxu3 %v3236_v38  ;;  %v3157_v38 = vld [vmem:[#allocation2 + $0x4f8] sm:$0xf0]  ;;  %v2840_v26 = vor.u32 %v3745_v21, %v2837_v22  ;;  %v3431_v21 = vld [vmem:[#allocation4 + $0xf0] sm:$0xf]  ;;  %v3895_v22 = vld [vmem:[#allocation4 + $0xf4] sm:$0xf0] }
  0xa7   :  { %1637 = vmatpush.bf16.msra.mxu0 %v2744_v45  ;;  %v2536_v45 = vor.u32 %v3669_v33, %v2533_v34  ;;  %v3160_v48 = vor.u32 %v3825_v35, %v3157_v38  ;;  %v2821_v33 = vld [vmem:[#allocation2 + $0x258] sm:$0xf0]  ;;  %v3773_v34 = vld [vmem:[#allocation2 + $0x34c] sm:$0xf] }
  0xa8   :  { %1583 = vmatpush.bf16.msra.mxu1 %v3092_v47  ;;  %v2661_v47 = vld [vmem:[#allocation2 + $0x118] sm:$0xf0] }
  0xa9   :  { %1624 = vmatpush.bf16.msrb.mxu2 %v2600_v46  ;;  %v3701_v46 = vld [vmem:[#allocation2 + $0x10c] sm:$0xf]  ;;  %v2949_v35 = vld [vmem:[#allocation2 + $0x358] sm:$0xf0] }
  0xaa   :  { %1597 = vmatpush.bf16.msra.mxu3 %v3220_v52  ;;  %3307 = vmatmul.msk.bf16.vlgmr.msrb.gmra.mxu0 %vm1323_vm0, %v4180_v50  ;;  %v3285_v52 = vld [vmem:[#allocation2 + $0x5f8] sm:$0xf0]  ;;  %v2952_v43 = vor.u32 %v3773_v34, %v2949_v35  ;;  %v3351_v35 = vld [vmem:[#allocation4 + $0x50] sm:$0xf] }
  0xab   :  { %1638 = vmatpush.bf16.msra.mxu0 %v2728_v61  ;;  %v2664_v61 = vor.u32 %v3701_v46, %v2661_v47  ;;  %v3288_v0 = vor.u32 %v3857_v51, %v3285_v52  ;;  %v2805_v46 = vld [vmem:[#allocation2 + $0x238] sm:$0xf0]  ;;  %v3769_v47 = vld [vmem:[#allocation2 + $0x32c] sm:$0xf]  ;;  %v4223_v52 = vld [vmem:[%s4277_s2] sm:$0xf] }
  0xac   :  { %1584 = vmatpush.bf16.msra.mxu1 %v3076_v63  ;;  %v2997_v63 = vld [vmem:[#allocation2 + $0x3b8] sm:$0xf0]  ;;  %v3837_v51 = vld [vmem:[#allocation2 + $0x54c] sm:$0xf] }
  0xad   :  { %1625 = vmatpush.bf16.msrb.mxu2 %v2584_v62  ;;  %v3785_v62 = vld [vmem:[#allocation2 + $0x3ac] sm:$0xf]  ;;  %v3208_v7 = vor.u32 %v3837_v51, %v3205_v57 }
  0xae   :  { %1598 = vmatpush.bf16.msra.mxu3 %v3204_v3  ;;  %v3853_v3 = vld [vmem:[#allocation2 + $0x5cc] sm:$0xf]  ;;  %v3000_v6 = vor.u32 %v3785_v62, %v2997_v63 }
  0xaf   :  { %1639 = vmatpush.bf16.msra.mxu0 %v2712_v10  ;;  %v2853_v10 = vld [vmem:[#allocation2 + $0x298] sm:$0xf0]  ;;  %v3733_v63 = vld [vmem:[#allocation2 + $0x20c] sm:$0xf] }
  0xb0   :  { %1585 = vmatpush.bf16.msra.mxu1 %v3060_v13  ;;  %v3272_v13 = vor.u32 %v3853_v3, %v3269_v4  ;;  %v2856_v15 = vor.u32 %v3749_v9, %v2853_v10  ;;  %v2917_v3 = vld [vmem:[#allocation2 + $0x318] sm:$0xf0]  ;;  %v3861_v4 = vld [vmem:[#allocation2 + $0x60c] sm:$0xf]  ;;  %v3367_v9 = vld [vmem:[#allocation4 + $0x70] sm:$0xf] }
  0xb1   :  { %1626 = vmatpush.bf16.msrb.mxu2 %v2568_v12  ;;  %v2981_v12 = vld [vmem:[#allocation2 + $0x398] sm:$0xf0]  ;;  %v3879_v10 = vld [vmem:[#allocation4 + $0x74] sm:$0xf0] }
  0xb2   :  { %1599 = vmatpush.bf16.msra.mxu3 %v3188_v17  ;;  %v3253_v17 = vld [vmem:[#allocation2 + $0x5b8] sm:$0xf0]  ;;  %v2984_v19 = vor.u32 %v3781_v11, %v2981_v12  ;;  %v3064_v11 = vor.u32 %v3801_v58, %v3061_v59  ;;  %v3368_v20 = vor.u32 %v3879_v10, %v3367_v9  ;;  %v3335_v58 = vld [vmem:[#allocation4 + $0x30] sm:$0xf]  ;;  %v3871_v59 = vld [vmem:[#allocation4 + $0x34] sm:$0xf0] }
  0xb3   :  { %1640 = vmatpush.bf16.msra.mxu0 %v2696_v24  ;;  %v2965_v24 = vld [vmem:[#allocation2 + $0x378] sm:$0xf0] }
  0xb4   :  { %1586 = vmatpush.bf16.msra.mxu1 %v3044_v28  ;;  %v3237_v28 = vld [vmem:[#allocation2 + $0x598] sm:$0xf0]  ;;  %v2968_v30 = vor.u32 %v3777_v23, %v2965_v24  ;;  %v3359_v24 = vld [vmem:[#allocation4 + $0x60] sm:$0xf] }
  0xb5   :  { %1627 = vmatpush.bf16.msrb.mxu2 %v2552_v27  ;;  %v3845_v27 = vld [vmem:[#allocation2 + $0x58c] sm:$0xf] }
  0xb6   :  { %1600 = vmatpush.bf16.msra.mxu3 %v3172_v31  ;;  %v3093_v31 = vld [vmem:[#allocation2 + $0x478] sm:$0xf0] }
  0xb7   :  { %1641 = vmatpush.bf16.msra.mxu0 %v2680_v41  ;;  %1587 = vmatmul.bf16.vlgmr.msra.gmra.mxu1 %v4196_v37  ;;  %v3805_v41 = vld [vmem:[#allocation2 + $0x44c] sm:$0xf] }
  0xb8   :  { %1649 = vmatpush.bf16.msrb.mxu1 %v2904_v32  ;;  %v3741_v32 = vld [vmem:[#allocation2 + $0x24c] sm:$0xf]  ;;  %v3080_v53 = vor.u32 %v3805_v41, %v3077_v44 }
  0xb9   :  { %1601 = vmatmul.bf16.vlgmr.msra.gmra.mxu3 %v4198_v42  ;;  %1628 = vmatpush.bf16.msrb.mxu2 %v2536_v45  ;;  %v2824_v38 = vor.u32 %v3741_v32, %v2821_v33  ;;  %v3737_v45 = vld [vmem:[#allocation2 + $0x22c] sm:$0xf]  ;;  %v3893_v32 = vld [vmem:[#allocation4 + $0xe4] sm:$0xf0] }
  0xba   :  { %1663 = vmatpush.bf16.msrb.mxu3 %v3032_v36  ;;  %v3096_v36 = vor.u32 %v3809_v29, %v3093_v31  ;;  %v3432_v29 = vor.u32 %v3895_v22, %v3431_v21  ;;  %v3423_v31 = vld [vmem:[#allocation4 + $0xe0] sm:$0xf]  ;;  %v3383_v22 = vld [vmem:[#allocation4 + $0x90] sm:$0xf] }
  0xbb   :  { %1642 = vmatpush.bf16.msra.mxu0 %v2664_v61  ;;  %v1336_v61 = vpop.f32.mrf.mxu0  ;;  %v3424_v41 = vor.u32 %v3893_v32, %v3423_v31  ;;  %v3375_v32 = vld [vmem:[#allocation4 + $0x80] sm:$0xf] }
  0xbc   :  { %1650 = vmatpush.bf16.msrb.mxu1 %v2888_v49  ;;  %1629 = vmatmul.bf16.vlgmr.msrb.gmra.mxu2 %v4158_v55  ;;  %v3256_v55 = vor.u32 %v3849_v16, %v3253_v17  ;;  %v3224_v49 = vor.u32 %v3841_v39, %v3221_v40  ;;  %v3797_v17 = vld [vmem:[#allocation2 + $0x40c] sm:$0xf]  ;;  %v1378_v39 = vpop.f32.mrf.mxu3 }
  0xbd   :  { %1677 = vmatpush.bf16.msra.mxu2 %v3160_v48  ;;  %v2933_v48 = vld [vmem:[#allocation2 + $0x338] sm:$0xf0] }
  0xbe   :  { %1664 = vmatpush.bf16.msrb.mxu3 %v3016_v56  ;;  %1643 = vmatmul.bf16.vlgmr.msra.gmra.mxu0 %v4170_v8  ;;  %v3240_v8 = vor.u32 %v3845_v27, %v3237_v28  ;;  %v2808_v56 = vor.u32 %v3737_v45, %v2805_v46  ;;  %v2936_v62 = vor.u32 %v3769_v47, %v2933_v48  ;;  %v3173_v27 = vld [vmem:[#allocation2 + $0x518] sm:$0xf0]  ;;  %v3415_v45 = vld [vmem:[#allocation4 + $0xd0] sm:$0xf]  ;;  %v3891_v46 = vld [vmem:[#allocation4 + $0xd4] sm:$0xf0] }
  0xbf   :  { %1691 = vmatpush.bf16.msrb.mxu0 %v3288_v0  ;;  %v2789_v0 = vld [vmem:[#allocation2 + $0x218] sm:$0xf0]  ;;  %v3873_v47 = vld [vmem:[#allocation4 + $0x44] sm:$0xf0] }
  0xc0   :  { %1651 = vmatpush.bf16.msrb.mxu1 %v2872_v2  ;;  %v1350_v2 = vpop.f32.mrf.mxu1  ;;  %v2792_v12 = vor.u32 %v3733_v63, %v2789_v0 }
  0xc1   :  { %1678 = vmatpush.bf16.msra.mxu2 %v3144_v1  ;;  %v3765_v1 = vld [vmem:[#allocation2 + $0x30c] sm:$0xf] }
  0xc2   :  { %1665 = vmatpush.bf16.msrb.mxu3 %v3000_v6  ;;  %v1364_v6 = vpop.f32.mrf.mxu2  ;;  %v2920_v16 = vor.u32 %v3765_v1, %v2917_v3  ;;  %v3336_v1 = vor.u32 %v3871_v59, %v3335_v58  ;;  %v3887_v3 = vld [vmem:[#allocation4 + $0xb4] sm:$0xf0]  ;;  %v3872_v58 = vld [vmem:[#allocation4 + $0x44] sm:$0xf]  ;;  %v3345_v59 = vld [vmem:[#allocation4 + $0x48] sm:$0xf0] }
  0xc3   :  { %1692 = vmatpush.bf16.msrb.mxu0 %v3272_v13  ;;  %v3833_v13 = vld [vmem:[#allocation2 + $0x52c] sm:$0xf]  ;;  %v1338_v33 = vpop.f32.mrf.mxu0 }
  0xc4   :  { %1652 = vmatpush.bf16.msrb.mxu1 %v2856_v15  ;;  %v300_v15 = vperm.slane %v4223_v52, 0 }
  0xc5   :  { %1679 = vmatpush.bf16.msra.mxu2 %v3128_v14  ;;  %v3189_v14 = vld [vmem:[#allocation2 + $0x538] sm:$0xf0] }
  0xc6   :  { %1666 = vmatpush.bf16.msrb.mxu3 %v2984_v19  ;;  %v3304_v19 = vor.u32 %v3861_v4, %v3301_v5  ;;  %v3192_v23 = vor.u32 %v3833_v13, %v3189_v14  ;;  %v1337_v28 = vadd.f32 %v1336_v61, %v300_v15  ;;  %v1380_v4 = vpop.f32.mrf.mxu3 }
  0xc7   :  { %1693 = vmatpush.bf16.msrb.mxu0 %v3256_v55  ;;  %v3877_v55 = vld [vmem:[#allocation4 + $0x64] sm:$0xf0] }
  0xc8   :  { %1653 = vmatpush.bf16.msrb.mxu1 %v2840_v26  ;;  %v3829_v26 = vld [vmem:[#allocation2 + $0x50c] sm:$0xf] }
  0xc9   :  { %1680 = vmatpush.bf16.msra.mxu2 %v3112_v25  ;;  %v3048_v25 = vor.u32 %v3797_v17, %v3045_v18  ;;  %v3176_v34 = vor.u32 %v3829_v26, %v3173_v27  ;;  %v3865_v26 = vld [vmem:[#allocation4 + $0x4] sm:$0xf0] }
  0xca   :  { %1667 = vmatpush.bf16.msrb.mxu3 %v2968_v30  ;;  %v3360_v30 = vor.u32 %v3877_v55, %v3359_v24  ;;  %v1366_v40 = vpop.f32.mrf.mxu2 }
  0xcb   :  { %1694 = vmatpush.bf16.msrb.mxu0 %v3240_v8  ;;  %v3875_v8 = vld [vmem:[#allocation4 + $0x54] sm:$0xf0] }
  0xcc   :  { %1654 = vmatpush.bf16.msrb.mxu1 %v2824_v38  ;;  %v1351_v38 = vadd.f32 %v1350_v2, %v1337_v28  ;;  %v3352_v44 = vor.u32 %v3875_v8, %v3351_v35  ;;  %v3399_v2 = vld [vmem:[#allocation4 + $0xb0] sm:$0xf]  ;;  %v3878_v28 = vld [vmem:[#allocation4 + $0x74] sm:$0xf] }
  0xcd   :  { %1681 = vmatpush.bf16.msra.mxu2 %v3096_v36  ;;  %v1352_v36 = vpop.f32.mrf.mxu1  ;;  %v3894_v8 = vld [vmem:[#allocation4 + $0xf4] sm:$0xf] }
  0xce   :  { %1668 = vmatpush.bf16.msrb.mxu3 %v2952_v43  ;;  %v1339_v43 = vadd.f32 %v1338_v33, %v300_v15  ;;  %v1365_v48 = vadd.f32 %v1364_v6, %v1351_v38  ;;  %v3869_v6 = vld [vmem:[#allocation4 + $0x24] sm:$0xf0]  ;;  %v3319_v15 = vld [vmem:[#allocation4 + $0x10] sm:$0xf] }
  0xcf   :  { %1695 = vmatpush.bf16.msrb.mxu0 %v3224_v49  ;;  %v3416_v49 = vor.u32 %v3891_v46, %v3415_v45  ;;  %v3881_v33 = vld [vmem:[#allocation4 + $0x84] sm:$0xf0] }
  0xd0   :  { %1655 = vmatpush.bf16.msrb.mxu1 %v2808_v56  ;;  %v3889_v56 = vld [vmem:[#allocation4 + $0xc4] sm:$0xf0] }
  0xd1   :  { %1682 = vmatpush.bf16.msra.mxu2 %v3080_v53  ;;  %v3407_v53 = vld [vmem:[#allocation4 + $0xc0] sm:$0xf] }
  0xd2   :  { %1669 = vmatpush.bf16.msrb.mxu3 %v2936_v62  ;;  %v1379_v62 = vadd.f32 %v1378_v39, %v1365_v48  ;;  %v1420_v63 = vpop.f32.mrf.mxu2  ;;  %v3876_v39 = vld [vmem:[#allocation4 + $0x64] sm:$0xf]  ;;  %v3874_v48 = vld [vmem:[#allocation4 + $0x54] sm:$0xf] }
  0xd3   :  { %1696 = vmatpush.bf16.msrb.mxu0 %v3208_v7  ;;  %v1392_v57 = vpop.f32.mrf.mxu0  ;;  %v3400_v7 = vor.u32 %v3887_v3, %v3399_v2  ;;  %v3870_v2 = vld [vmem:[#allocation4 + $0x34] sm:$0xf]  ;;  %v3337_v3 = vld [vmem:[#allocation4 + $0x38] sm:$0xf0] }
  0xd4   :  { %1656 = vmatpush.bf16.msrb.mxu1 %v2792_v12  ;;  %v1393_v5 = vadd.f32 %v1392_v57, %v1379_v62  ;;  %v3885_v12 = vld [vmem:[#allocation4 + $0xa4] sm:$0xf0]  ;;  %v301_v57 = vperm.slane %v4223_v52, 1 }
  0xd5   :  { %1683 = vmatpush.bf16.msra.mxu2 %v3064_v11  ;;  %v1406_v61 = vpop.f32.mrf.mxu1  ;;  %v3391_v11 = vld [vmem:[#allocation4 + $0xa0] sm:$0xf] }
  0xd6   :  { %1670 = vmatpush.bf16.msrb.mxu3 %v2920_v16  ;;  %v1407_v13 = vadd.f32 %v1406_v61, %v1393_v5  ;;  %v3867_v16 = vld [vmem:[#allocation4 + $0x14] sm:$0xf0] }
  0xd7   :  { %1697 = vmatpush.bf16.msrb.mxu0 %v3192_v23  ;;  %1657 = vmatmul.bf16.vlgmr.msrb.gmra.mxu1 %v4156_v54  ;;  %v3343_v54 = vld [vmem:[#allocation4 + $0x40] sm:$0xf]  ;;  %v3320_v21 = vor.u32 %v3867_v16, %v3319_v15  ;;  %v3883_v23 = vld [vmem:[#allocation4 + $0x94] sm:$0xf0]  ;;  %v3495_v15 = vld [vmem:[#allocation4 + $0x170] sm:$0xf] }
  0xd8   :  { %1712 = vmatpush.bf16.msra.mxu1 %v3304_v19  ;;  %v3344_v51 = vor.u32 %v3873_v47, %v3343_v54  ;;  %v3392_v19 = vor.u32 %v3885_v12, %v3391_v11  ;;  %v1421_v24 = vadd.f32 %v1420_v63, %v1407_v13  ;;  %v3892_v54 = vld [vmem:[#allocation4 + $0xe4] sm:$0xf]  ;;  %v3425_v47 = vld [vmem:[#allocation4 + $0xe8] sm:$0xf0]  ;;  %v3348_v63 = vor.u32 %v3872_v58, %v3345_v59  ;;  %v3911_v16 = vld [vmem:[#allocation4 + $0x174] sm:$0xf0] }
  0xd9   :  { %1671 = vmatmul.bf16.vlgmr.msrb.gmra.mxu3 %v4160_v60  ;;  %1684 = vmatpush.bf16.msra.mxu2 %v3048_v25  ;;  %v1353_v60 = vadd.f32 %v1352_v36, %v1339_v43  ;;  %v3311_v25 = vld [vmem:[#allocation4] sm:$0xf]  ;;  %v3433_v36 = vld [vmem:[#allocation4 + $0xf8] sm:$0xf0]  ;;  %v3376_v43 = vor.u32 %v3881_v33, %v3375_v32  ;;  %v3864_v32 = vld [vmem:[#allocation4 + $0x4] sm:$0xf] }
  0xda   :  { %2121 = vmatpush.bf16.msra.mxu3 %v3368_v20  ;;  %v1422_v55 = vpop.f32.mrf.mxu2  ;;  %v3312_v31 = vor.u32 %v3865_v26, %v3311_v25  ;;  %v3321_v25 = vld [vmem:[#allocation4 + $0x18] sm:$0xf0]  ;;  %v3487_v26 = vld [vmem:[#allocation4 + $0x160] sm:$0xf]  ;;  %v3882_v33 = vld [vmem:[#allocation4 + $0x94] sm:$0xf] }
  0xdb   :  { %1698 = vmatpush.bf16.msrb.mxu0 %v3176_v34  ;;  %v1367_v0 = vadd.f32 %v1366_v40, %v1353_v60  ;;  %v1394_v14 = vpop.f32.mrf.mxu0  ;;  %v1719_v34 = vmax.f32 %v1421_v24, 0.0  ;;  %v3361_v40 = vld [vmem:[#allocation4 + $0x68] sm:$0xf0]  ;;  %v3428_v60 = vor.u32 %v3892_v54, %v3425_v47  ;;  %v3463_v58 = vld [vmem:[#allocation4 + $0x130] sm:$0xf] }
  0xdc   :  { %2135 = vmatpush.bf16.msrb.mxu1 %v3432_v29  ;;  %1685 = vmatmul.bf16.vlgmr.msra.gmra.mxu2 %v4196_v37  ;;  %v3408_v37 = vor.u32 %v3889_v56, %v3407_v53  ;;  %v3369_v29 = vld [vmem:[#allocation4 + $0x78] sm:$0xf0]  ;;  %v1434_v38 = vpop.f32.mrf.mxu3  ;;  %v3364_v46 = vor.u32 %v3876_v39, %v3361_v40  ;;  %v3890_v53 = vld [vmem:[#allocation4 + $0xd4] sm:$0xf]  ;;  %v3907_v39 = vld [vmem:[#allocation4 + $0x154] sm:$0xf0] }
  0xdd   :  { %v1381_v9 = vadd.f32 %v1380_v4, %v1367_v0  ;;  %v1408_v18 = vpop.f32.mrf.mxu1  ;;  %v3372_v35 = vor.u32 %v3878_v28, %v3369_v29  ;;  %v3417_v56 = vld [vmem:[#allocation4 + $0xd8] sm:$0xf0]  ;;  %v3409_v0 = vld [vmem:[#allocation4 + $0xc8] sm:$0xf0]  ;;  %v3903_v59 = vld [vmem:[#allocation4 + $0x134] sm:$0xf0] }
  0xde   :  { %2122 = vmatpush.bf16.msra.mxu3 %v3360_v30  ;;  %1699 = vmatmul.bf16.vlgmr.msrb.gmra.mxu0 %v4198_v42  ;;  %v3327_v42 = vld [vmem:[#allocation4 + $0x20] sm:$0xf]  ;;  %v3420_v62 = vor.u32 %v3890_v53, %v3417_v56  ;;  %v3377_v54 = vld [vmem:[#allocation4 + $0x88] sm:$0xf0] }
  0xdf   :  { %v3328_v10 = vor.u32 %v3869_v6, %v3327_v42  ;;  %v1395_v17 = vadd.f32 %v1394_v14, %v1381_v9  ;;  %v3340_v6 = vor.u32 %v3870_v2, %v3337_v3  ;;  %v3886_v9 = vld [vmem:[#allocation4 + $0xb4] sm:$0xf]  ;;  %v3329_v14 = vld [vmem:[#allocation4 + $0x28] sm:$0xf0] }
  0xe0   :  { %2136 = vmatpush.bf16.msrb.mxu1 %v3424_v41 }
  0xe1   :  { %v1409_v20 = vadd.f32 %v1408_v18, %v1395_v17  ;;  %v3496_v17 = vor.u32 %v3911_v16, %v3495_v15  ;;  %v3497_v16 = vld [vmem:[#allocation4 + $0x178] sm:$0xf0] }
  0xe2   :  { %2123 = vmatpush.bf16.msra.mxu3 %v3352_v44  ;;  %v3436_v44 = vor.u32 %v3894_v8, %v3433_v36  ;;  %v1448_v45 = vpop.f32.mrf.mxu2  ;;  %v3313_v36 = vld [vmem:[#allocation4 + $0x8] sm:$0xf0] }
  0xe3   :  { %v1423_v27 = vadd.f32 %v1422_v55, %v1409_v20  ;;  %v3866_v20 = vld [vmem:[#allocation4 + $0x14] sm:$0xf]  ;;  %2149 = vmatpush.bf16.msrb.mxu2 %v3496_v17 }
  0xe4   :  { %2137 = vmatpush.bf16.msrb.mxu1 %v3416_v49  ;;  %v3353_v49 = vld [vmem:[#allocation4 + $0x58] sm:$0xf0]  ;;  %v1436_v61 = vpop.f32.mrf.mxu3 }
  0xe5   :  { %v1723_v30 = vmax.f32 %v1423_v27, 0.0  ;;  %v1437_v12 = vadd.f32 %v1436_v61, %v301_v57  ;;  %v3909_v27 = vld [vmem:[#allocation4 + $0x164] sm:$0xf0]  ;;  %v3464_v61 = vor.u32 %v3903_v59, %v3463_v58 }
  0xe6   :  { %2124 = vmatpush.bf16.msra.mxu3 %v3344_v51  ;;  %v3356_v51 = vor.u32 %v3874_v48, %v3353_v49  ;;  %v3488_v29 = vor.u32 %v3909_v27, %v3487_v26  ;;  %v3471_v49 = vld [vmem:[#allocation4 + $0x140] sm:$0xf]  ;;  %v3481_v26 = vld [vmem:[#allocation4 + $0x158] sm:$0xf0] }
  0xe7   :  { %3308 = vmatmul.msk.bf16.vlgmr.msra.gmra.mxu1 %vm1323_vm0, %v4180_v50  ;;  %v3384_v50 = vor.u32 %v3883_v23, %v3383_v22  ;;  %v4232_v41 = vpack.c.bf16 %v1723_v30, %v1719_v34  ;;  %v3393_v22 = vld [vmem:[#allocation4 + $0xa8] sm:$0xf0]  ;;  %v3385_v34 = vld [vmem:[#allocation4 + $0x98] sm:$0xf0] }
  0xe8   :  { %2138 = vmatpush.bf16.msrb.mxu1 %v3408_v37  ;;  %v3888_v37 = vld [vmem:[#allocation4 + $0xc4] sm:$0xf]  ;;  %2150 = vmatpush.bf16.msrb.mxu2 %v3488_v29  ;;  %v3925_v29 = vld [vmem:[#allocation4 + $0x1e4] sm:$0xf0] }
  0xe9   :  { %v3412_v42 = vor.u32 %v3888_v37, %v3409_v0  ;;  %v3455_v37 = vld [vmem:[#allocation4 + $0x120] sm:$0xf]  ;;  %v3901_v0 = vld [vmem:[#allocation4 + $0x124] sm:$0xf0] }
  0xea   :  { %2125 = vmatpush.bf16.msra.mxu3 %v3336_v1  ;;  %v1435_v1 = vadd.f32 %v1434_v38, %v301_v57  ;;  %v1450_v5 = vpop.f32.mrf.mxu2  ;;  %v3479_v38 = vld [vmem:[#allocation4 + $0x150] sm:$0xf]  ;;  %v3456_v2 = vor.u32 %v3901_v0, %v3455_v37 }
  0xeb   :  { %v1451_v24 = vadd.f32 %v1450_v5, %v1437_v12 }
  0xec   :  { %2139 = vmatpush.bf16.msrb.mxu1 %v3400_v7  ;;  %v3868_v7 = vld [vmem:[#allocation4 + $0x24] sm:$0xf]  ;;  %v1449_v11 = vadd.f32 %v1448_v45, %v1435_v1  ;;  %v3316_v45 = vor.u32 %v3864_v32, %v3313_v36 }
  0xee   :  { %2126 = vmatpush.bf16.msra.mxu3 %v3328_v10  ;;  %v3401_v10 = vld [vmem:[#allocation4 + $0xb8] sm:$0xf0] }
  0xef   :  { %v3404_v18 = vor.u32 %v3886_v9, %v3401_v10  ;;  %v3447_v9 = vld [vmem:[#allocation4 + $0x110] sm:$0xf]  ;;  %v3899_v10 = vld [vmem:[#allocation4 + $0x114] sm:$0xf0] }
  0xf0   :  { %2140 = vmatpush.bf16.msrb.mxu1 %v3392_v19  ;;  %v3332_v19 = vor.u32 %v3868_v7, %v3329_v14  ;;  %v3897_v14 = vld [vmem:[#allocation4 + $0x104] sm:$0xf0] }
  0xf2   :  { %2127 = vmatpush.bf16.msra.mxu3 %v3320_v21  ;;  %v3884_v21 = vld [vmem:[#allocation4 + $0xa4] sm:$0xf] }
  0xf3   :  { %v1462_v4 = vpop.f32.mrf.mxu0 }
  0xf4   :  { %2141 = vmatpush.bf16.msrb.mxu1 %v3384_v50  ;;  %v1476_v13 = vpop.f32.mrf.mxu1  ;;  %v1463_v23 = vadd.f32 %v1462_v4, %v1449_v11  ;;  %v3396_v50 = vor.u32 %v3884_v21, %v3393_v22  ;;  %v3448_v11 = vor.u32 %v3899_v10, %v3447_v9  ;;  %v3559_v21 = vld [vmem:[#allocation4 + $0x1f0] sm:$0xf]  ;;  %v3927_v22 = vld [vmem:[#allocation4 + $0x1f4] sm:$0xf0] }
  0xf5   :  { %v3511_v10 = vld [vmem:[#allocation4 + $0x190] sm:$0xf] }
  0xf6   :  { %2128 = vmatpush.bf16.msra.mxu3 %v3312_v31  ;;  %v3324_v31 = vor.u32 %v3866_v20, %v3321_v25  ;;  %v3560_v25 = vor.u32 %v3927_v22, %v3559_v21  ;;  %v3926_v22 = vld [vmem:[#allocation4 + $0x1f4] sm:$0xf] }
  0xf8   :  { %2142 = vmatpush.bf16.msrb.mxu1 %v3376_v43  ;;  %v3480_v43 = vor.u32 %v3907_v39, %v3479_v38  ;;  %2163 = vmatpush.bf16.msra.mxu0 %v3560_v25  ;;  %v3902_v38 = vld [vmem:[#allocation4 + $0x134] sm:$0xf]  ;;  %v3465_v39 = vld [vmem:[#allocation4 + $0x138] sm:$0xf0] }
  0xf9   :  { %2129 = vmatmul.bf16.vlgmr.msra.gmra.mxu3 %v4232_v41 }
  0xfa   :  { %2177 = vmatpush.bf16.msrb.mxu3 %v3372_v35  ;;  %v1477_v35 = vadd.f32 %v1476_v13, %v1463_v23  ;;  %2151 = vmatpush.bf16.msrb.mxu2 %v3480_v43  ;;  %v3439_v13 = vld [vmem:[#allocation4 + $0x100] sm:$0xf]  ;;  %v3906_v23 = vld [vmem:[#allocation4 + $0x154] sm:$0xf] }
  0xfb   :  { %v1464_v28 = vpop.f32.mrf.mxu0  ;;  %v3440_v15 = vor.u32 %v3897_v14, %v3439_v13  ;;  %v3484_v27 = vor.u32 %v3906_v23, %v3481_v26  ;;  %v3535_v43 = vld [vmem:[#allocation4 + $0x1c0] sm:$0xf]  ;;  %v3561_v23 = vld [vmem:[#allocation4 + $0x1f8] sm:$0xf0] }
  0xfc   :  { %2191 = vmatpush.bf16.msra.mxu1 %v3436_v44  ;;  %v1490_v55 = vpop.f32.mrf.mxu3  ;;  %v1465_v8 = vadd.f32 %v1464_v28, %v1451_v24  ;;  %v1478_v40 = vpop.f32.mrf.mxu1  ;;  %v3388_v44 = vor.u32 %v3882_v33, %v3385_v34  ;;  %v3551_v28 = vld [vmem:[#allocation4 + $0x1e0] sm:$0xf]  ;;  %v3543_v34 = vld [vmem:[#allocation4 + $0x1d0] sm:$0xf]  ;;  %v3564_v25 = vor.u32 %v3926_v22, %v3561_v23 }
  0xfd   :  { %v1491_v47 = vadd.f32 %v1490_v55, %v1477_v35  ;;  %v3923_v35 = vld [vmem:[#allocation4 + $0x1d4] sm:$0xf0] }
  0xfe   :  { %2178 = vmatpush.bf16.msrb.mxu3 %v3364_v46  ;;  %v3880_v46 = vld [vmem:[#allocation4 + $0x84] sm:$0xf]  ;;  %v1479_v48 = vadd.f32 %v1478_v40, %v1465_v8  ;;  %v302_v8 = vperm.slane %v4223_v52, 2  ;;  %v3544_v36 = vor.u32 %v3923_v35, %v3543_v34  ;;  %v3468_v40 = vor.u32 %v3902_v38, %v3465_v39  ;;  %v3545_v34 = vld [vmem:[#allocation4 + $0x1d8] sm:$0xf0] }
  0xff   :  { %v1504_v30 = vpop.f32.mrf.mxu2  ;;  %v3380_v57 = vor.u32 %v3880_v46, %v3377_v54 }
 0x100   :  { %2192 = vmatpush.bf16.msra.mxu1 %v3428_v60  ;;  %v3905_v60 = vld [vmem:[#allocation4 + $0x144] sm:$0xf0] }
 0x101   :  { %v3472_v56 = vor.u32 %v3905_v60, %v3471_v49 }
 0x102   :  { %2179 = vmatpush.bf16.msrb.mxu3 %v3356_v51 }
 0x103   :  { %v1518_v53 = vpop.f32.mrf.mxu0  ;;  %2152 = vmatpush.bf16.msrb.mxu2 %v3472_v56  ;;  %v3898_v56 = vld [vmem:[#allocation4 + $0x114] sm:$0xf] }
 0x104   :  { %2193 = vmatpush.bf16.msra.mxu1 %v3420_v62  ;;  %v1492_v51 = vpop.f32.mrf.mxu3  ;;  %v1505_v62 = vadd.f32 %v1504_v30, %v1491_v47  ;;  %v3552_v30 = vor.u32 %v3925_v29, %v3551_v28  ;;  %v3924_v28 = vld [vmem:[#allocation4 + $0x1e4] sm:$0xf]  ;;  %v3553_v29 = vld [vmem:[#allocation4 + $0x1e8] sm:$0xf0] }
 0x106   :  { %2180 = vmatpush.bf16.msrb.mxu3 %v3348_v63  ;;  %v1493_v63 = vadd.f32 %v1492_v51, %v1479_v48  ;;  %v1519_v3 = vadd.f32 %v1518_v53, %v1505_v62  ;;  %2164 = vmatpush.bf16.msra.mxu0 %v3552_v30  ;;  %v3457_v48 = vld [vmem:[#allocation4 + $0x128] sm:$0xf0]  ;;  %v3527_v51 = vld [vmem:[#allocation4 + $0x1b0] sm:$0xf]  ;;  %v3919_v53 = vld [vmem:[#allocation4 + $0x1b4] sm:$0xf0] }
 0x107   :  { %v1506_v1 = vpop.f32.mrf.mxu2  ;;  %2153 = vmatpush.bf16.msrb.mxu2 %v3464_v61  ;;  %v3528_v59 = vor.u32 %v3919_v53, %v3527_v51  ;;  %v3449_v61 = vld [vmem:[#allocation4 + $0x118] sm:$0xf0]  ;;  %v3916_v53 = vld [vmem:[#allocation4 + $0x1a4] sm:$0xf] }
 0x108   :  { %2194 = vmatpush.bf16.msra.mxu1 %v3412_v42  ;;  %v1507_v4 = vadd.f32 %v1506_v1, %v1493_v63  ;;  %v3452_v37 = vor.u32 %v3898_v56, %v3449_v61  ;;  %v3521_v56 = vld [vmem:[#allocation4 + $0x1a8] sm:$0xf0]  ;;  %v3513_v61 = vld [vmem:[#allocation4 + $0x198] sm:$0xf0] }
 0x10a   :  { %2181 = vmatpush.bf16.msrb.mxu3 %v3340_v6  ;;  %v1720_v6 = vmax.f32 %v1519_v3, 0.0  ;;  %2165 = vmatpush.bf16.msra.mxu0 %v3544_v36  ;;  %v3917_v3 = vld [vmem:[#allocation4 + $0x1a4] sm:$0xf0] }
 0x10b   :  { %v1520_v5 = vpop.f32.mrf.mxu0  ;;  %2154 = vmatpush.bf16.msrb.mxu2 %v3456_v2  ;;  %v3519_v2 = vld [vmem:[#allocation4 + $0x1a0] sm:$0xf] }
 0x10c   :  { %2195 = vmatpush.bf16.msra.mxu1 %v3404_v18  ;;  %v1521_v42 = vadd.f32 %v1520_v5, %v1507_v4  ;;  %v3908_v18 = vld [vmem:[#allocation4 + $0x164] sm:$0xf]  ;;  %v3520_v5 = vor.u32 %v3917_v3, %v3519_v2  ;;  %v3505_v3 = vld [vmem:[#allocation4 + $0x188] sm:$0xf0] }
 0x10d   :  { %v3896_v4 = vld [vmem:[#allocation4 + $0x104] sm:$0xf] }
 0x10e   :  { %2182 = vmatpush.bf16.msrb.mxu3 %v3332_v19  ;;  %v1724_v7 = vmax.f32 %v1521_v42, 0.0  ;;  %v3489_v19 = vld [vmem:[#allocation4 + $0x168] sm:$0xf0] }
 0x10f   :  { %2155 = vmatpush.bf16.msrb.mxu2 %v3448_v11  ;;  %v3492_v20 = vor.u32 %v3908_v18, %v3489_v19  ;;  %v3441_v42 = vld [vmem:[#allocation4 + $0x108] sm:$0xf0]  ;;  %v3915_v11 = vld [vmem:[#allocation4 + $0x194] sm:$0xf0]  ;;  %v3913_v18 = vld [vmem:[#allocation4 + $0x184] sm:$0xf0] }
 0x110   :  { %2196 = vmatpush.bf16.msra.mxu1 %v3396_v50  ;;  %v1728_v12 = vpack.c.bf16 %v1724_v7, %v1720_v6  ;;  %v3904_v50 = vld [vmem:[#allocation4 + $0x144] sm:$0xf]  ;;  %v3444_v9 = vor.u32 %v3896_v4, %v3441_v42  ;;  %v3512_v13 = vor.u32 %v3915_v11, %v3511_v10 }
 0x112   :  { %2183 = vmatpush.bf16.msrb.mxu3 %v3324_v31  ;;  %2143 = vmatmul.bf16.vlgmr.msrb.gmra.mxu1 %v1728_v12  ;;  %v3473_v31 = vld [vmem:[#allocation4 + $0x148] sm:$0xf0] }
 0x113   :  { %2156 = vmatpush.bf16.msrb.mxu2 %v3440_v15  ;;  %v3476_v32 = vor.u32 %v3904_v50, %v3473_v31  ;;  %v3556_v31 = vor.u32 %v3924_v28, %v3553_v29  ;;  %v3943_v28 = vld [vmem:[#allocation6 + $0x78] sm:$0xff]  ;;  %v3930_v29 = vld [vmem:[#allocation6 + $0x10] sm:$0xff] }
 0x114   :  { %2197 = vmatpush.bf16.msra.mxu1 %v3388_v44  ;;  %v1532_v24 = vpop.f32.mrf.mxu1  ;;  %v3921_v44 = vld [vmem:[#allocation4 + $0x1c4] sm:$0xf0] }
 0x115   :  { %v3536_v47 = vor.u32 %v3921_v44, %v3535_v43  ;;  %v1533_v60 = vadd.f32 %v1532_v24, %v302_v8  ;;  %v3920_v43 = vld [vmem:[#allocation4 + $0x1c4] sm:$0xf]  ;;  %v3537_v44 = vld [vmem:[#allocation4 + $0x1c8] sm:$0xf0] }
 0x116   :  { %2184 = vmatpush.bf16.msrb.mxu3 %v3316_v45  ;;  %v3900_v45 = vld [vmem:[#allocation4 + $0x124] sm:$0xf] }
 0x117   :  { %v1560_v55 = vpop.f32.mrf.mxu0  ;;  %v3460_v49 = vor.u32 %v3900_v45, %v3457_v48  ;;  %2166 = vmatpush.bf16.msra.mxu0 %v3536_v47  ;;  %v3540_v45 = vor.u32 %v3920_v43, %v3537_v44  ;;  %v303_v47 = vperm.slane %v4223_v52, 3  ;;  %v3912_v52 = vld [vmem:[#allocation4 + $0x184] sm:$0xf] }
 0x118   :  { %2198 = vmatpush.bf16.msra.mxu1 %v3380_v57  ;;  %v3936_v43 = vld [vmem:[#allocation6 + $0x40] sm:$0xff] }
 0x119   :  { %2185 = vmatmul.bf16.vlgmr.msrb.gmra.mxu3 %v4232_v41  ;;  %v3910_v41 = vld [vmem:[#allocation4 + $0x174] sm:$0xf] }
 0x11a   :  { %v3500_v17 = vor.u32 %v3910_v41, %v3497_v16 }
 0x11b   :  { %2167 = vmatpush.bf16.msra.mxu0 %v3528_v59  ;;  %v3914_v59 = vld [vmem:[#allocation4 + $0x194] sm:$0xf] }
 0x11c   :  { %2205 = vmatpush.bf16.msra.mxu2 %v3500_v17  ;;  %v1546_v33 = vpop.f32.mrf.mxu3  ;;  %v1534_v46 = vpop.f32.mrf.mxu1  ;;  %v3503_v17 = vld [vmem:[#allocation4 + $0x180] sm:$0xf]  ;;  %2385 = vmatpush.bf16.msrb.mxu1 %v3943_v28 }
 0x11d   :  { %v1547_v62 = vadd.f32 %v1546_v33, %v1533_v60  ;;  %v1535_v63 = vadd.f32 %v1534_v46, %v302_v8  ;;  %v3504_v21 = vor.u32 %v3913_v18, %v3503_v17  ;;  %v3922_v33 = vld [vmem:[#allocation4 + $0x1d4] sm:$0xf] }
 0x11e   :  { %v3548_v36 = vor.u32 %v3922_v33, %v3545_v34  ;;  %v3918_v46 = vld [vmem:[#allocation4 + $0x1b4] sm:$0xf]  ;;  %v3940_v33 = vld [vmem:[#allocation6 + $0x60] sm:$0xff]  ;;  %v3939_v34 = vld [vmem:[#allocation6 + $0x58] sm:$0xff] }
 0x11f   :  { %v1562_v54 = vpop.f32.mrf.mxu0  ;;  %v1574_v57 = vpop.f32.mrf.mxu2  ;;  %v1561_v6 = vadd.f32 %v1560_v55, %v1547_v62  ;;  %2168 = vmatpush.bf16.msra.mxu0 %v3520_v5  ;;  %v3516_v62 = vor.u32 %v3914_v59, %v3513_v61  ;;  %v3508_v5 = vor.u32 %v3912_v52, %v3505_v3 }
 0x120   :  { %2206 = vmatpush.bf16.msra.mxu2 %v3492_v20 }
 0x121   :  { %v1575_v14 = vadd.f32 %v1574_v57, %v1561_v6 }
 0x122   :  { %2199 = vmatmul.bf16.vlgmr.msra.gmra.mxu1 %v1728_v12 }
 0x123   :  { %2169 = vmatpush.bf16.msra.mxu0 %v3512_v13 }
 0x124   :  { %2207 = vmatpush.bf16.msra.mxu2 %v3484_v27  ;;  %v1548_v58 = vpop.f32.mrf.mxu3 }
 0x125   :  { %v1549_v7 = vadd.f32 %v1548_v58, %v1535_v63  ;;  %v3524_v58 = vor.u32 %v3916_v53, %v3521_v56 }
 0x127   :  { %v1616_v1 = vpop.f32.mrf.mxu0  ;;  %v1563_v15 = vadd.f32 %v1562_v54, %v1549_v7  ;;  %v1576_v41 = vpop.f32.mrf.mxu2  ;;  %2170 = vmatpush.bf16.msra.mxu0 %v3504_v21  ;;  %v3529_v54 = vld [vmem:[#allocation4 + $0x1b8] sm:$0xf0] }
 0x128   :  { %2208 = vmatpush.bf16.msra.mxu2 %v3476_v32  ;;  %v3532_v48 = vor.u32 %v3918_v46, %v3529_v54  ;;  %v3951_v54 = vld [vmem:[%s4282_s7 + $0x38] sm:$0xff] }
 0x129   :  { %v1577_v24 = vadd.f32 %v1576_v41, %v1563_v15 }
 0x12b   :  { %2219 = vmatpush.bf16.msrb.mxu0 %v3564_v25  ;;  %v3933_v25 = vld [vmem:[#allocation6 + $0x28] sm:$0xff] }
 0x12c   :  { %2209 = vmatpush.bf16.msra.mxu2 %v3468_v40 }
 0x12f   :  { %v1618_v20 = vpop.f32.mrf.mxu0  ;;  %2220 = vmatpush.bf16.msrb.mxu0 %v3556_v31  ;;  %v3941_v31 = vld [vmem:[#allocation6 + $0x68] sm:$0xff] }
 0x130   :  { %2210 = vmatpush.bf16.msra.mxu2 %v3460_v49 }
 0x133   :  { %2221 = vmatpush.bf16.msrb.mxu0 %v3548_v36 }
 0x134   :  { %v1588_v0 = vpop.f32.mrf.mxu1  ;;  %2211 = vmatpush.bf16.msra.mxu2 %v3452_v37 }
 0x135   :  { %v1589_v16 = vadd.f32 %v1588_v0, %v1575_v14 }
 0x137   :  { %2222 = vmatpush.bf16.msrb.mxu0 %v3540_v45 }
 0x138   :  { %2212 = vmatpush.bf16.msra.mxu2 %v3444_v9 }
 0x13b   :  { %v1644_v39 = vpop.f32.mrf.mxu0  ;;  %2223 = vmatpush.bf16.msrb.mxu0 %v3532_v48 }
 0x13c   :  { %v1602_v12 = vpop.f32.mrf.mxu3  ;;  %v1590_v19 = vpop.f32.mrf.mxu1 }
 0x13d   :  { %v1603_v55 = vadd.f32 %v1602_v12, %v1589_v16  ;;  %v1591_v26 = vadd.f32 %v1590_v19, %v1577_v24  ;;  %v3935_v24 = vld [vmem:[#allocation6 + $0x38] sm:$0xff] }
 0x13e   :  { %2371 = vmatpush.bf16.msra.mxu3 %v3935_v24  ;;  %v3944_v24 = vld [vmem:[%s4282_s7] sm:$0xff] }
 0x13f   :  { %v1617_v50 = vadd.f32 %v1616_v1, %v1603_v55  ;;  %v1630_v38 = vpop.f32.mrf.mxu2  ;;  %2224 = vmatpush.bf16.msrb.mxu0 %v3524_v58  ;;  %v3934_v55 = vld [vmem:[#allocation6 + $0x30] sm:$0xff] }
 0x140   :  { %v1631_v57 = vadd.f32 %v1630_v38, %v303_v47 }
 0x141   :  { %v1721_v35 = vmax.f32 %v1617_v50, 0.0  ;;  %v3942_v50 = vld [vmem:[#allocation6 + $0x70] sm:$0xff] }
 0x142   :  { %v1645_v63 = vadd.f32 %v1644_v39, %v1631_v57  ;;  %2372 = vmatpush.bf16.msra.mxu3 %v3934_v55  ;;  %2386 = vmatpush.bf16.msrb.mxu1 %v3942_v50  ;;  %v3937_v39 = vld [vmem:[#allocation6 + $0x48] sm:$0xff] }
 0x143   :  { %v1646_v51 = vpop.f32.mrf.mxu0  ;;  %2225 = vmatpush.bf16.msrb.mxu0 %v3516_v62 }
 0x144   :  { %v1604_v27 = vpop.f32.mrf.mxu3 }
 0x145   :  { %v1605_v30 = vadd.f32 %v1604_v27, %v1591_v26  ;;  %v3932_v26 = vld [vmem:[#allocation6 + $0x20] sm:$0xff]  ;;  %v3931_v27 = vld [vmem:[#allocation6 + $0x18] sm:$0xff] }
 0x146   :  { %2373 = vmatpush.bf16.msra.mxu3 %v3933_v25  ;;  %2387 = vmatpush.bf16.msrb.mxu1 %v3941_v31 }
 0x147   :  { %v1619_v32 = vadd.f32 %v1618_v20, %v1605_v30  ;;  %v1632_v60 = vpop.f32.mrf.mxu2  ;;  %2226 = vmatpush.bf16.msrb.mxu0 %v3508_v5  ;;  %v3929_v30 = vld [vmem:[#allocation6 + $0x8] sm:$0xff] }
 0x148   :  { %v1633_v0 = vadd.f32 %v1632_v60, %v303_v47  ;;  %v3950_v60 = vld [vmem:[%s4282_s7 + $0x30] sm:$0xff] }
 0x149   :  { %v1725_v8 = vmax.f32 %v1619_v32, 0.0  ;;  %v3928_v32 = vld [vmem:[#allocation6] sm:$0xff] }
 0x14a   :  { %v1647_v42 = vadd.f32 %v1646_v51, %v1633_v0  ;;  %2374 = vmatpush.bf16.msra.mxu3 %v3932_v26  ;;  %2388 = vmatpush.bf16.msrb.mxu1 %v3940_v33  ;;  %v3962_v26 = vld [vmem:[#allocation7] ss:$0 sm:$0xff] }
 0x14b   :  { %v1729_v40 = vpack.c.bf16 %v1725_v8, %v1721_v35  ;;  %v3938_v35 = vld [vmem:[#allocation6 + $0x50] sm:$0xff] }
 0x14d   :  { %2157 = vmatmul.bf16.vlgmr.msrb.gmra.mxu2 %v1729_v40 }
 0x14e   :  { %2375 = vmatpush.bf16.msra.mxu3 %v3931_v27  ;;  %2389 = vmatpush.bf16.msrb.mxu1 %v3939_v34 }
 0x14f   :  { %2470 = vmatpush.bf16.msrb.mxu2 %v3951_v54 }
 0x152   :  { %2376 = vmatpush.bf16.msra.mxu3 %v3930_v29  ;;  %2390 = vmatpush.bf16.msrb.mxu1 %v3938_v35  ;;  %v3963_v35 = vld [vmem:[%s4283_s8] ss:$0 sm:$0xff] }
 0x153   :  { %2471 = vmatpush.bf16.msrb.mxu2 %v3950_v60 }
 0x154   :  { %v1658_v49 = vpop.f32.mrf.mxu1 }
 0x155   :  { %v1659_v4 = vadd.f32 %v1658_v49, %v1645_v63 }
 0x156   :  { %2377 = vmatpush.bf16.msra.mxu3 %v3929_v30  ;;  %2391 = vmatpush.bf16.msrb.mxu1 %v3937_v39 }
 0x15a   :  { %2378 = vmatpush.bf16.msra.mxu3 %v3928_v32  ;;  %2392 = vmatpush.bf16.msrb.mxu1 %v3936_v43 }
 0x15b   :  { %v1700_v6 = vpop.f32.mrf.mxu0 }
 0x15c   :  { %v1672_v37 = vpop.f32.mrf.mxu3  ;;  %v1660_v1 = vpop.f32.mrf.mxu1 }
 0x15d   :  { %2213 = vmatmul.bf16.vlgmr.msra.gmra.mxu2 %v1729_v40  ;;  %v1673_v7 = vadd.f32 %v1672_v37, %v1659_v4  ;;  %v1661_v9 = vadd.f32 %v1660_v1, %v1647_v42  ;;  %v1795_v40 = vld [vmem:[%s4279_s4] sm:$0x3] }
 0x15e   :  { %v1797_v44 = vperm.slane %v1795_v40, 0  ;;  %v1798_v52 = vperm.slane %v1795_v40, 1 }
 0x15f   :  { %v1686_v2 = vpop.f32.mrf.mxu2 }
 0x160   :  { %v1687_v13 = vadd.f32 %v1686_v2, %v1673_v7 }
 0x162   :  { %v1701_v41 = vadd.f32 %v1700_v6, %v1687_v13 }
 0x163   :  { %v1702_v16 = vpop.f32.mrf.mxu0 }
 0x164   :  { %v1674_v10 = vpop.f32.mrf.mxu3  ;;  %v1714_v12 = vpop.f32.mrf.mxu1 }
 0x165   :  { %v1675_v11 = vadd.f32 %v1674_v10, %v1661_v9  ;;  %v1715_v17 = vadd.f32 %v1714_v12, %v1701_v41 }
 0x167   :  { %v1688_v14 = vpop.f32.mrf.mxu2  ;;  %v1722_v21 = vmax.f32 %v1715_v17, 0.0 }
 0x168   :  { %v1689_v15 = vadd.f32 %v1688_v14, %v1675_v11 }
 0x16a   :  { %v1703_v18 = vadd.f32 %v1702_v16, %v1689_v15 }
 0x16c   :  { %v1716_v19 = vpop.f32.mrf.mxu1 }
 0x16d   :  { %v1717_v20 = vadd.f32 %v1716_v19, %v1703_v18  ;;  %v3949_v19 = vld [vmem:[%s4282_s7 + $0x28] sm:$0xff] }
 0x16e   :  { %2472 = vmatpush.bf16.msrb.mxu2 %v3949_v19 }
 0x16f   :  { %v1726_v22 = vmax.f32 %v1717_v20, 0.0  ;;  %v3948_v20 = vld [vmem:[%s4282_s7 + $0x20] sm:$0xff] }
 0x171   :  { %v1730_v23 = vpack.c.bf16 %v1726_v22, %v1722_v21  ;;  %v3947_v21 = vld [vmem:[%s4282_s7 + $0x18] sm:$0xff]  ;;  %v3946_v22 = vld [vmem:[%s4282_s7 + $0x10] sm:$0xff] }
 0x172   :  { %2473 = vmatpush.bf16.msrb.mxu2 %v3948_v20 }
 0x173   :  { %2171 = vmatmul.bf16.vlgmr.msra.gmra.mxu0 %v1730_v23 }
 0x176   :  { %2474 = vmatpush.bf16.msrb.mxu2 %v3947_v21 }
 0x17a   :  { %2475 = vmatpush.bf16.msrb.mxu2 %v3946_v22 }
 0x17c   :  { %v2130_v8 = vpop.f32.mrf.mxu3 }
 0x17d   :  { %v2131_v49 = vadd.f32 %v2130_v8, %v1797_v44 }
 0x183   :  { %2227 = vmatmul.bf16.vlgmr.msrb.gmra.mxu0 %v1730_v23  ;;  %v3945_v23 = vld [vmem:[%s4282_s7 + $0x8] sm:$0xff] }
 0x184   :  { %v2132_v45 = vpop.f32.mrf.mxu3  ;;  %2476 = vmatpush.bf16.msrb.mxu2 %v3945_v23 }
 0x185   :  { %v2133_v51 = vadd.f32 %v2132_v45, %v1797_v44 }
 0x188   :  { %2477 = vmatpush.bf16.msrb.mxu2 %v3944_v24 }
 0x18f   :  { %v2144_v36 = vpop.f32.mrf.mxu1 }
 0x190   :  { %v2145_v53 = vadd.f32 %v2144_v36, %v2131_v49 }
 0x197   :  { %v2146_v46 = vpop.f32.mrf.mxu1 }
 0x198   :  { %v2147_v56 = vadd.f32 %v2146_v46, %v2133_v51 }
 0x19c   :  { %v2186_v58 = vpop.f32.mrf.mxu3 }
 0x19d   :  { %v2187_v42 = vadd.f32 %v2186_v58, %v1798_v52 }
 0x19f   :  { %v2200_v62 = vpop.f32.mrf.mxu1 }
 0x1a0   :  { %v2201_v9 = vadd.f32 %v2200_v62, %v2187_v42 }
 0x1a4   :  { %v2188_v4 = vpop.f32.mrf.mxu3 }
 0x1a5   :  { %v2189_v7 = vadd.f32 %v2188_v4, %v1798_v52 }
 0x1a7   :  { %v2202_v6 = vpop.f32.mrf.mxu1 }
 0x1a8   :  { %v2203_v11 = vadd.f32 %v2202_v6, %v2189_v7 }
 0x1d0   :  { %v2158_v38 = vpop.f32.mrf.mxu2 }
 0x1d1   :  { %v2159_v57 = vadd.f32 %v2158_v38, %v2145_v53 }
 0x1d8   :  { %v2160_v47 = vpop.f32.mrf.mxu2 }
 0x1d9   :  { %v2161_v59 = vadd.f32 %v2160_v47, %v2147_v56 }
 0x1e0   :  { %v2214_v0 = vpop.f32.mrf.mxu2 }
 0x1e1   :  { %v2215_v12 = vadd.f32 %v2214_v0, %v2201_v9 }
 0x1e8   :  { %v2216_v10 = vpop.f32.mrf.mxu2 }
 0x1e9   :  { %v2217_v13 = vadd.f32 %v2216_v10, %v2203_v11 }
 0x1f0   :  { %v2172_v48 = vpop.f32.mrf.mxu0 }
 0x1f1   :  { %v2173_v61 = vadd.f32 %v2172_v48, %v2159_v57 }
 0x1f3   :  { %v2233_v1 = vmax.f32 %v2173_v61, 0.0 }
 0x1f8   :  { %v2174_v63 = vpop.f32.mrf.mxu0 }
 0x1f9   :  { %v2175_v37 = vadd.f32 %v2174_v63, %v2161_v59 }
 0x1fb   :  { %v2235_v2 = vmax.f32 %v2175_v37, 0.0 }
 0x1fd   :  { %v2237_v3 = vpack.c.bf16 %v2235_v2, %v2233_v1 }
 0x1ff   :  { %2379 = vmatmul.bf16.vlgmr.msra.gmra.mxu3 %v2237_v3 }
 0x200   :  { %v2228_v5 = vpop.f32.mrf.mxu0 }
 0x201   :  { %v2229_v14 = vadd.f32 %v2228_v5, %v2215_v12 }
 0x203   :  { %v2234_v16 = vmax.f32 %v2229_v14, 0.0 }
 0x208   :  { %v2230_v15 = vpop.f32.mrf.mxu0 }
 0x209   :  { %v2231_v41 = vadd.f32 %v2230_v15, %v2217_v13 }
 0x20b   :  { %v2236_v17 = vmax.f32 %v2231_v41, 0.0 }
 0x20d   :  { %v2238_v18 = vpack.c.bf16 %v2236_v17, %v2234_v16 }
 0x20f   :  { %2393 = vmatmul.bf16.vlgmr.msrb.gmra.mxu1 %v2238_v18 }
 0x282   :  { %v2380_v55 = vpop.f32.mrf.mxu3 }
 0x283   :  { %v2381_v28 = vadd.f32 %v3962_v26, %v2380_v55 }
 0x28a   :  { %v2382_v27 = vpop.f32.mrf.mxu3 }
 0x28b   :  { %v2383_v29 = vadd.f32 %v3962_v26, %v2382_v27 }
 0x28c   :  { %v2394_v25 = vpop.f32.mrf.mxu1 }
 0x28d   :  { %v2395_v50 = vadd.f32 %v2394_v25, %v2381_v28 }
 0x28f   :  { %v2399_v32 = vmax.f32 %v2395_v50, 0.0 }
 0x294   :  { %v2396_v30 = vpop.f32.mrf.mxu1 }
 0x295   :  { %v2397_v31 = vadd.f32 %v2396_v30, %v2383_v29 }
 0x297   :  { %v2400_v33 = vmax.f32 %v2397_v31, 0.0 }
 0x299   :  { %v2401_v34 = vpack.c.bf16 %v2400_v33, %v2399_v32 }
 0x29b   :  { %2478 = vmatmul.bf16.vlgmr.msrb.gmra.mxu2 %v2401_v34 }
 0x31e   :  { %v2479_v8 = vpop.f32.mrf.mxu2 }
 0x31f   :  { %v2480_v36 = vadd.f32 %v3963_v35, %v2479_v8 }
 0x321   :  { %2484 = vst [vmem:[%s4284_s9] sm:$0xff] %v2480_v36 }
 0x326   :  { %v2481_v38 = vpop.f32.mrf.mxu2 }
 0x327   :  { %v2482_v39 = vadd.f32 %v3963_v35, %v2481_v38 }
 0x329   :  { %2485 = vst [vmem:[%s4284_s9 + $0x8] sm:$0xff] %v2482_v39 }
 0x32a   :  { %2490 = vsyncpa [#allocation3], 1 }
 0x32b   :  { %2491 = vsyncpa [#allocation5], 1 }
 0x32c   :  { %2492 = vsyncpa [#allocation8], 1 }

</bundles_post_ra>
